<compile_context>
chip_gen: v6e
topology: v6e:2x2x1
jax: 0.10.0
libtpu: 0.0.40
codegen_flags: <defaults>
</compile_context>

<pallas_src>
import jax
import jax.numpy as jnp
from jax.experimental import pallas as pl
from jax.experimental.pallas import tpu as pltpu

# ---------------- scaled-down BERT config (BERT-base is 768/12/12/3072) ----------------
VOCAB = 1000
TYPE_VOCAB = 2
MAX_POS = 64
H = 128          # hidden size
NH = 4           # attention heads
DH = H // NH     # head dim
FF = 512         # intermediate size
LAYERS = 2
SEQ = 8          # sequence length (multiple of 8 -> full sublane tiles)
LN_EPS = 1e-12   # BERT LayerNorm eps
HEAD_PAD = 128   # QA head output padded to a lane-dense width


def _layer_norm(x, g, b, eps):
    mu = jnp.mean(x, axis=-1, keepdims=True)
    var = jnp.mean(jnp.square(x - mu), axis=-1, keepdims=True)
    return (x - mu) * jax.lax.rsqrt(var + eps) * g + b


# ---------------- the single fused kernel ----------------
def _bert_fused_kernel(x_emb_ref, bias_ref, emb_g_ref, emb_b_ref,
                       wqkv_ref, bqkv_ref, wo_ref, bo_ref, ln1g_ref, ln1b_ref,
                       wi_ref, bi_ref, wf_ref, bfc_ref, ln2g_ref, ln2b_ref,
                       w_head_ref, b_head_ref,
                       logits_ref, x_sc):
    l = pl.program_id(1)
    scale = 1.0 / (DH ** 0.5)

    @pl.when(l == 0)
    def _():
        # embedding LayerNorm (no residual, no zeros round-trip)
        x_sc[...] = _layer_norm(x_emb_ref[...], emb_g_ref[...], emb_b_ref[...], LN_EPS)

    x2 = x_sc[...]                                            # (S, H) f32

    # ---- attention: fused QKV matmul, all heads in-kernel ----
    qkv = jnp.dot(x2.astype(jnp.bfloat16), wqkv_ref[0],
                  preferred_element_type=jnp.float32) + bqkv_ref[0]   # (S, 3H) f32
    q, k, v = qkv[:, :H], qkv[:, H:2 * H], qkv[:, 2 * H:]
    bias = bias_ref[0]                                        # (1, S) additive key mask
    wo = wo_ref[0]                                            # (H, H) bf16

    attn_out = None
    for h in range(NH):
        sl = slice(h * DH, (h + 1) * DH)
        qh = q[:, sl].astype(jnp.bfloat16)
        kh = k[:, sl].astype(jnp.bfloat16)
        vh = v[:, sl].astype(jnp.bfloat16)
        s = jnp.einsum('qd,kd->qk', qh, kh,
                       preferred_element_type=jnp.float32) * scale + bias   # (S, S) f32
        s = s - jnp.max(s, axis=-1, keepdims=True)
        p = jnp.exp(s)
        p = p * pl.reciprocal(jnp.sum(p, axis=-1, keepdims=True), approx=True)
        ctx_h = jnp.dot(p.astype(jnp.bfloat16), vh,
                        preferred_element_type=jnp.float32)                 # (S, DH)
        # fold the per-head output projection in -> output stays lane-dense at H=128
        contrib = jnp.dot(ctx_h.astype(jnp.bfloat16), wo[sl, :],
                          preferred_element_type=jnp.float32)               # (S, H)
        attn_out = contrib if attn_out is None else attn_out + contrib
    attn_out = attn_out + bo_ref[0]

    x2 = _layer_norm(attn_out + x2, ln1g_ref[0], ln1b_ref[0], LN_EPS)

    # ---- feed-forward ----
    ff = jnp.dot(x2.astype(jnp.bfloat16), wi_ref[0],
                 preferred_element_type=jnp.float32) + bi_ref[0]
    # TODO(synk): HF BERT uses exact erf-GELU; tanh-approximate GELU is used here.
    ff = jax.nn.gelu(ff, approximate=True)
    ff = jnp.dot(ff.astype(jnp.bfloat16), wf_ref[0],
                 preferred_element_type=jnp.float32) + bfc_ref[0]
    x2 = _layer_norm(ff + x2, ln2g_ref[0], ln2b_ref[0], LN_EPS)

    x_sc[...] = x2

    @pl.when(l == pl.num_programs(1) - 1)
    def _():
        # QA head; weight padded to (H, 128) so the store is lane-dense (cols 0:2 real)
        logits = jnp.dot(x2, w_head_ref[...],
                         preferred_element_type=jnp.float32) + b_head_ref[...]
        logits_ref[...] = logits.astype(logits_ref.dtype)


# ---------------- parameters (deterministic synthetic init) ----------------
def init_params(key):
    def normal(k, shape, scale=0.02):
        return scale * jax.random.normal(k, shape, dtype=jnp.float32)

    keys = iter(jax.random.split(key, 128))
    params = {
        "word_emb": normal(next(keys), (VOCAB, H)),
        "pos_emb": normal(next(keys), (MAX_POS, H)),
        "type_emb": normal(next(keys), (TYPE_VOCAB, H)),
        "emb_ln_g": jnp.ones((H,), jnp.float32),
        "emb_ln_b": jnp.zeros((H,), jnp.float32),
        "layers": [],
        "l0_w": normal(next(keys), (H, 2)),
        "l0_b": jnp.zeros((2,), jnp.float32),
    }
    for _ in range(LAYERS):
        params["layers"].append({
            "wq": normal(next(keys), (H, H)), "bq": jnp.zeros((H,), jnp.float32),
            "wk": normal(next(keys), (H, H)), "bk": jnp.zeros((H,), jnp.float32),
            "wv": normal(next(keys), (H, H)), "bv": jnp.zeros((H,), jnp.float32),
            "wo": normal(next(keys), (H, H)), "bo": jnp.zeros((H,), jnp.float32),
            "ln1_g": jnp.ones((H,), jnp.float32), "ln1_b": jnp.zeros((H,), jnp.float32),
            "wi": normal(next(keys), (H, FF)), "bi": jnp.zeros((FF,), jnp.float32),
            "wf": normal(next(keys), (FF, H)), "bf": jnp.zeros((H,), jnp.float32),
            "ln2_g": jnp.ones((H,), jnp.float32), "ln2_b": jnp.zeros((H,), jnp.float32),
        })
    return params


# ---------------- forward (mirrors BERTBaseUncased.forward) ----------------
def bert_qa_forward(p, ids, mask, token_type_ids):
    B, S = ids.shape
    assert S == SEQ
    L = len(p["layers"])
    bf16 = jnp.bfloat16

    # Embedding gathers are glue (plain JAX); everything else runs in one fused kernel.
    x = p["word_emb"][ids] + p["pos_emb"][:S][None, :, :] + p["type_emb"][token_type_ids]
    x_emb = x.reshape(B * S, H).astype(jnp.float32)

    # extended attention mask -> additive key bias, one row per batch element
    bias = ((1.0 - mask.astype(jnp.float32)) * -10000.0).reshape(B, 1, S)

    # fuse Wq|Wk|Wv and stack per-layer weights along a leading layer axis (bf16 for MXU)
    lrs = p["layers"]
    wqkv = jnp.stack([jnp.concatenate([l["wq"], l["wk"], l["wv"]], axis=1) for l in lrs]).astype(bf16)
    bqkv = jnp.stack([jnp.concatenate([l["bq"], l["bk"], l["bv"]])[None, :] for l in lrs])
    wo   = jnp.stack([l["wo"] for l in lrs]).astype(bf16)
    bo   = jnp.stack([l["bo"][None, :] for l in lrs])
    ln1g = jnp.stack([l["ln1_g"][None, :] for l in lrs])
    ln1b = jnp.stack([l["ln1_b"][None, :] for l in lrs])
    wi   = jnp.stack([l["wi"] for l in lrs]).astype(bf16)
    bi   = jnp.stack([l["bi"][None, :] for l in lrs])
    wf   = jnp.stack([l["wf"] for l in lrs]).astype(bf16)
    bfc  = jnp.stack([l["bf"][None, :] for l in lrs])
    ln2g = jnp.stack([l["ln2_g"][None, :] for l in lrs])
    ln2b = jnp.stack([l["ln2_b"][None, :] for l in lrs])

    emb_g = p["emb_ln_g"].reshape(1, H)
    emb_b = p["emb_ln_b"].reshape(1, H)

    # pad the (H, 2) QA head to a lane-dense (H, 128); real logits live in columns 0:2
    w_head = jnp.zeros((H, HEAD_PAD), jnp.float32).at[:, :2].set(p["l0_w"])
    b_head = jnp.zeros((1, HEAD_PAD), jnp.float32).at[0, :2].set(p["l0_b"])

    per_batch2 = lambda b, l: (b, 0)
    per_batch3 = lambda b, l: (b, 0, 0)
    const2     = lambda b, l: (0, 0)
    per_layer3 = lambda b, l: (l, 0, 0)

    logits_padded = pl.pallas_call(
        _bert_fused_kernel,
        out_shape=jax.ShapeDtypeStruct((B * S, HEAD_PAD), jnp.float32),
        grid=(B, L),
        in_specs=[
            pl.BlockSpec((S, H), per_batch2),            # x_emb
            pl.BlockSpec((1, 1, S), per_batch3),         # mask bias
            pl.BlockSpec((1, H), const2),                # emb_ln_g
            pl.BlockSpec((1, H), const2),                # emb_ln_b
            pl.BlockSpec((1, H, 3 * H), per_layer3),     # wqkv
            pl.BlockSpec((1, 1, 3 * H), per_layer3),     # bqkv
            pl.BlockSpec((1, H, H), per_layer3),         # wo
            pl.BlockSpec((1, 1, H), per_layer3),         # bo
            pl.BlockSpec((1, 1, H), per_layer3),         # ln1_g
            pl.BlockSpec((1, 1, H), per_layer3),         # ln1_b
            pl.BlockSpec((1, H, FF), per_layer3),        # wi
            pl.BlockSpec((1, 1, FF), per_layer3),        # bi
            pl.BlockSpec((1, FF, H), per_layer3),        # wf
            pl.BlockSpec((1, 1, H), per_layer3),         # bf
            pl.BlockSpec((1, 1, H), per_layer3),         # ln2_g
            pl.BlockSpec((1, 1, H), per_layer3),         # ln2_b
            pl.BlockSpec((H, HEAD_PAD), const2),         # w_head (padded)
            pl.BlockSpec((1, HEAD_PAD), const2),         # b_head (padded)
        ],
        out_specs=pl.BlockSpec((S, HEAD_PAD), per_batch2),
        scratch_shapes=[pltpu.VMEM((S, H), jnp.float32)],
        compiler_params=pltpu.CompilerParams(
            dimension_semantics=("parallel", "arbitrary")),
    )(x_emb, bias, emb_g, emb_b, wqkv, bqkv, wo, bo, ln1g, ln1b,
      wi, bi, wf, bfc, ln2g, ln2b, w_head, b_head)

    # TODO(synk): BertModel's pooled_output (tanh pooler on [CLS]) is computed but unused
    # by this head, so it is skipped here.
    logits = logits_padded[:, :2].reshape(B, S, 2)   # == self.l0(sequence_output)
    start_logits = logits[..., 0]                    # split(1, dim=-1) + squeeze(-1)
    end_logits = logits[..., 1]
    return start_logits, end_logits


if __name__ == "__main__":
    B, S = 2, SEQ
    key = jax.random.PRNGKey(0)
    k_param, k_ids = jax.random.split(key)

    params = init_params(k_param)
    ids = jax.random.randint(k_ids, (B, S), 0, VOCAB, dtype=jnp.int32)
    mask = jnp.array([[1, 1, 1, 1, 1, 1, 1, 1],
                      [1, 1, 1, 1, 1, 1, 0, 0]], dtype=jnp.int32)
    token_type_ids = jnp.array([[0, 0, 0, 0, 1, 1, 1, 1],
                                [0, 0, 0, 1, 1, 1, 1, 1]], dtype=jnp.int32)

    start_logits, end_logits = bert_qa_forward(params, ids, mask, token_type_ids)
    jax.block_until_ready((start_logits, end_logits))
    assert start_logits.shape == (B, S) and end_logits.shape == (B, S)
    assert bool(jnp.all(jnp.isfinite(start_logits))) and bool(jnp.all(jnp.isfinite(end_logits)))
    print("KERNEL_OK")
</pallas_src>

<mosaic_0001>
module attributes {stable_mosaic.version = 11 : i64} {
  func.func @_bert_fused_kernel(%arg0: i32, %arg1: i32, %arg2: memref<8x128xf32, #tpu.memory_space<vmem>>, %arg3: memref<1x1x8xf32, #tpu.memory_space<vmem>>, %arg4: memref<1x128xf32, #tpu.memory_space<vmem>>, %arg5: memref<1x128xf32, #tpu.memory_space<vmem>>, %arg6: memref<1x128x384xbf16, #tpu.memory_space<vmem>>, %arg7: memref<1x1x384xf32, #tpu.memory_space<vmem>>, %arg8: memref<1x128x128xbf16, #tpu.memory_space<vmem>>, %arg9: memref<1x1x128xf32, #tpu.memory_space<vmem>>, %arg10: memref<1x1x128xf32, #tpu.memory_space<vmem>>, %arg11: memref<1x1x128xf32, #tpu.memory_space<vmem>>, %arg12: memref<1x128x512xbf16, #tpu.memory_space<vmem>>, %arg13: memref<1x1x512xf32, #tpu.memory_space<vmem>>, %arg14: memref<1x512x128xbf16, #tpu.memory_space<vmem>>, %arg15: memref<1x1x128xf32, #tpu.memory_space<vmem>>, %arg16: memref<1x1x128xf32, #tpu.memory_space<vmem>>, %arg17: memref<1x1x128xf32, #tpu.memory_space<vmem>>, %arg18: memref<128x128xf32, #tpu.memory_space<vmem>>, %arg19: memref<1x128xf32, #tpu.memory_space<vmem>>, %arg20: memref<8x128xf32, #tpu.memory_space<vmem>>, %arg21: memref<8x128xf32, #tpu.memory_space<vmem>>) attributes {dimension_semantics = [#tpu.dimension_semantics<parallel>, #tpu.dimension_semantics<arbitrary>], iteration_bounds = array<i64: 2, 2>, scalar_prefetch = 0 : i64, scratch_operands = 1 : i64, tpu.core_type = #tpu.core_type<tc>, window_params = [{transform_indices = @transform_0, window_bounds = array<i64: 8, 128>}, {transform_indices = @transform_1, window_bounds = array<i64: 1, 1, 8>}, {pipeline_mode = #tpu.pipeline_mode<synchronous>, transform_indices = @transform_2, window_bounds = array<i64: 1, 128>}, {pipeline_mode = #tpu.pipeline_mode<synchronous>, transform_indices = @transform_3, window_bounds = array<i64: 1, 128>}, {transform_indices = @transform_4, window_bounds = array<i64: 1, 128, 384>}, {transform_indices = @transform_5, window_bounds = array<i64: 1, 1, 384>}, {transform_indices = @transform_6, window_bounds = array<i64: 1, 128, 128>}, {transform_indices = @transform_7, window_bounds = array<i64: 1, 1, 128>}, {transform_indices = @transform_8, window_bounds = array<i64: 1, 1, 128>}, {transform_indices = @transform_9, window_bounds = array<i64: 1, 1, 128>}, {transform_indices = @transform_10, window_bounds = array<i64: 1, 128, 512>}, {transform_indices = @transform_11, window_bounds = array<i64: 1, 1, 512>}, {transform_indices = @transform_12, window_bounds = array<i64: 1, 512, 128>}, {transform_indices = @transform_13, window_bounds = array<i64: 1, 1, 128>}, {transform_indices = @transform_14, window_bounds = array<i64: 1, 1, 128>}, {transform_indices = @transform_15, window_bounds = array<i64: 1, 1, 128>}, {pipeline_mode = #tpu.pipeline_mode<synchronous>, transform_indices = @transform_16, window_bounds = array<i64: 128, 128>}, {pipeline_mode = #tpu.pipeline_mode<synchronous>, transform_indices = @transform_17, window_bounds = array<i64: 1, 128>}, {transform_indices = @transform_18, window_bounds = array<i64: 8, 128>}]} {
    %c0_i32 = arith.constant 0 : i32
    %0 = arith.cmpi eq, %arg1, %c0_i32 : i32
    %1 = arith.extui %0 : i1 to i32
    %c0_i32_0 = arith.constant 0 : i32
    %2 = arith.cmpi ne, %1, %c0_i32_0 : i32
    scf.if %2 {
      %c0_84 = arith.constant 0 : index
      %c0_85 = arith.constant 0 : index
      %217 = vector.load %arg2[%c0_84, %c0_85] : memref<8x128xf32, #tpu.memory_space<vmem>>, vector<8x128xf32>
      %c0_86 = arith.constant 0 : index
      %c0_87 = arith.constant 0 : index
      %218 = vector.load %arg4[%c0_86, %c0_87] : memref<1x128xf32, #tpu.memory_space<vmem>>, vector<1x128xf32>
      %c0_88 = arith.constant 0 : index
      %c0_89 = arith.constant 0 : index
      %219 = vector.load %arg5[%c0_88, %c0_89] : memref<1x128xf32, #tpu.memory_space<vmem>>, vector<1x128xf32>
      %cst_90 = arith.constant dense<0.000000e+00> : vector<8xf32>
      %220 = vector.multi_reduction <add>, %217, %cst_90 [1] : vector<8x128xf32> to vector<8xf32>
      %221 = vector.shape_cast %220 : vector<8xf32> to vector<8x1xf32>
      %cst_91 = arith.constant 1.280000e+02 : f32
      %222 = vector.broadcast %cst_91 : f32 to vector<8x1xf32>
      %223 = arith.divf %221, %222 : vector<8x1xf32>
      %224 = vector.broadcast %223 : vector<8x1xf32> to vector<8x128xf32>
      %225 = arith.subf %217, %224 : vector<8x128xf32>
      %226 = arith.mulf %225, %225 : vector<8x128xf32>
      %cst_92 = arith.constant dense<0.000000e+00> : vector<8xf32>
      %227 = vector.multi_reduction <add>, %226, %cst_92 [1] : vector<8x128xf32> to vector<8xf32>
      %228 = vector.shape_cast %227 : vector<8xf32> to vector<8x1xf32>
      %cst_93 = arith.constant 1.280000e+02 : f32
      %229 = vector.broadcast %cst_93 : f32 to vector<8x1xf32>
      %230 = arith.divf %228, %229 : vector<8x1xf32>
      %231 = vector.broadcast %223 : vector<8x1xf32> to vector<8x128xf32>
      %232 = arith.subf %217, %231 : vector<8x128xf32>
      %cst_94 = arith.constant 9.99999996E-13 : f32
      %233 = vector.broadcast %cst_94 : f32 to vector<8x1xf32>
      %234 = arith.addf %230, %233 : vector<8x1xf32>
      %235 = math.rsqrt %234 : vector<8x1xf32>
      %236 = vector.broadcast %235 : vector<8x1xf32> to vector<8x128xf32>
      %237 = arith.mulf %232, %236 : vector<8x128xf32>
      %238 = vector.broadcast %218 : vector<1x128xf32> to vector<8x128xf32>
      %239 = arith.mulf %237, %238 : vector<8x128xf32>
      %240 = vector.broadcast %219 : vector<1x128xf32> to vector<8x128xf32>
      %241 = arith.addf %239, %240 : vector<8x128xf32>
      %c0_95 = arith.constant 0 : index
      %c0_96 = arith.constant 0 : index
      %242 = vector.load %arg21[%c0_95, %c0_96] : memref<8x128xf32, #tpu.memory_space<vmem>>, vector<8x128xf32>
      tpu.vector_store %arg21[%c0_95, %c0_96], %241 {strides = array<i32>} : memref<8x128xf32, #tpu.memory_space<vmem>>, vector<8x128xf32>,
    } else {
    }
    %c0 = arith.constant 0 : index
    %c0_1 = arith.constant 0 : index
    %3 = vector.load %arg21[%c0, %c0_1] : memref<8x128xf32, #tpu.memory_space<vmem>>, vector<8x128xf32>
    %4 = arith.truncf %3 : vector<8x128xf32> to vector<8x128xbf16>
    %c0_2 = arith.constant 0 : index
    %c0_3 = arith.constant 0 : index
    %c0_4 = arith.constant 0 : index
    %5 = vector.load %arg6[%c0_2, %c0_3, %c0_4] : memref<1x128x384xbf16, #tpu.memory_space<vmem>>, vector<1x128x384xbf16>
    %6 = vector.shape_cast %5 : vector<1x128x384xbf16> to vector<128x384xbf16>
    %cst = arith.constant dense<0.000000e+00> : vector<8x384xf32>
    %7 = tpu.matmul %4, %6, %cst {dimension_numbers = #tpu.dot_dimension_numbers<[1], [0], [0], [1], [0, 0, 1, 1], [], []>} : vector<8x128xbf16>, vector<128x384xbf16>, vector<8x384xf32> -> vector<8x384xf32>
    %c0_5 = arith.constant 0 : index
    %c0_6 = arith.constant 0 : index
    %c0_7 = arith.constant 0 : index
    %8 = vector.load %arg7[%c0_5, %c0_6, %c0_7] : memref<1x1x384xf32, #tpu.memory_space<vmem>>, vector<1x1x384xf32>
    %9 = vector.shape_cast %8 : vector<1x1x384xf32> to vector<1x384xf32>
    %10 = vector.broadcast %9 : vector<1x384xf32> to vector<8x384xf32>
    %11 = arith.addf %7, %10 : vector<8x384xf32>
    %12 = vector.extract_strided_slice %11 {offsets = [0, 0], sizes = [8, 128], strides = [1, 1]} : vector<8x384xf32> to vector<8x128xf32>
    %13 = vector.extract_strided_slice %11 {offsets = [0, 128], sizes = [8, 128], strides = [1, 1]} : vector<8x384xf32> to vector<8x128xf32>
    %14 = vector.extract_strided_slice %11 {offsets = [0, 256], sizes = [8, 128], strides = [1, 1]} : vector<8x384xf32> to vector<8x128xf32>
    %c0_8 = arith.constant 0 : index
    %c0_9 = arith.constant 0 : index
    %c0_10 = arith.constant 0 : index
    %15 = vector.load %arg3[%c0_8, %c0_9, %c0_10] : memref<1x1x8xf32, #tpu.memory_space<vmem>>, vector<1x1x8xf32>
    %16 = vector.shape_cast %15 : vector<1x1x8xf32> to vector<1x8xf32>
    %c0_11 = arith.constant 0 : index
    %c0_12 = arith.constant 0 : index
    %c0_13 = arith.constant 0 : index
    %17 = vector.load %arg8[%c0_11, %c0_12, %c0_13] : memref<1x128x128xbf16, #tpu.memory_space<vmem>>, vector<1x128x128xbf16>
    %18 = vector.shape_cast %17 : vector<1x128x128xbf16> to vector<128x128xbf16>
    %19 = vector.extract_strided_slice %12 {offsets = [0, 0], sizes = [8, 32], strides = [1, 1]} : vector<8x128xf32> to vector<8x32xf32>
    %20 = arith.truncf %19 : vector<8x32xf32> to vector<8x32xbf16>
    %21 = vector.extract_strided_slice %13 {offsets = [0, 0], sizes = [8, 32], strides = [1, 1]} : vector<8x128xf32> to vector<8x32xf32>
    %22 = arith.truncf %21 : vector<8x32xf32> to vector<8x32xbf16>
    %23 = vector.extract_strided_slice %14 {offsets = [0, 0], sizes = [8, 32], strides = [1, 1]} : vector<8x128xf32> to vector<8x32xf32>
    %24 = arith.truncf %23 : vector<8x32xf32> to vector<8x32xbf16>
    "tpu.trace_start"() <{level = 10 : i32, message = "qd,kd->qk"}> : () -> ()
    %cst_14 = arith.constant dense<0.000000e+00> : vector<8x8xf32>
    %25 = tpu.matmul %20, %22, %cst_14 {dimension_numbers = #tpu.dot_dimension_numbers<[1], [1], [0], [0], [0, 0, 1, 0], [], []>} : vector<8x32xbf16>, vector<8x32xbf16>, vector<8x8xf32> -> vector<8x8xf32>
    "tpu.trace_stop"() : () -> ()
    %cst_15 = arith.constant 0.176776692 : f32
    %26 = vector.broadcast %cst_15 : f32 to vector<8x8xf32>
    %27 = arith.mulf %25, %26 : vector<8x8xf32>
    %28 = vector.broadcast %16 : vector<1x8xf32> to vector<8x8xf32>
    %29 = arith.addf %27, %28 : vector<8x8xf32>
    %cst_16 = arith.constant dense<0xFF800000> : vector<8xf32>
    %30 = vector.multi_reduction <maximumf>, %29, %cst_16 [1] : vector<8x8xf32> to vector<8xf32>
    %31 = vector.shape_cast %30 : vector<8xf32> to vector<8x1xf32>
    %32 = vector.broadcast %31 : vector<8x1xf32> to vector<8x8xf32>
    %33 = arith.subf %29, %32 : vector<8x8xf32>
    %34 = math.exp %33 : vector<8x8xf32>
    %cst_17 = arith.constant dense<0.000000e+00> : vector<8xf32>
    %35 = vector.multi_reduction <add>, %34, %cst_17 [1] : vector<8x8xf32> to vector<8xf32>
    %36 = vector.shape_cast %35 : vector<8xf32> to vector<8x1xf32>
    %37 = tpu.reciprocal %36 {approx = true} : vector<8x1xf32> -> vector<8x1xf32>
    %38 = vector.broadcast %37 : vector<8x1xf32> to vector<8x8xf32>
    %39 = arith.mulf %34, %38 : vector<8x8xf32>
    %40 = arith.truncf %39 : vector<8x8xf32> to vector<8x8xbf16>
    %cst_18 = arith.constant dense<0.000000e+00> : vector<8x32xf32>
    %41 = tpu.matmul %40, %24, %cst_18 {dimension_numbers = #tpu.dot_dimension_numbers<[1], [0], [0], [1], [0, 0, 1, 1], [], []>} : vector<8x8xbf16>, vector<8x32xbf16>, vector<8x32xf32> -> vector<8x32xf32>
    %42 = arith.truncf %41 : vector<8x32xf32> to vector<8x32xbf16>
    %43 = vector.extract_strided_slice %18 {offsets = [0, 0], sizes = [32, 128], strides = [1, 1]} : vector<128x128xbf16> to vector<32x128xbf16>
    %cst_19 = arith.constant dense<0.000000e+00> : vector<8x128xf32>
    %44 = tpu.matmul %42, %43, %cst_19 {dimension_numbers = #tpu.dot_dimension_numbers<[1], [0], [0], [1], [0, 0, 1, 1], [], []>} : vector<8x32xbf16>, vector<32x128xbf16>, vector<8x128xf32> -> vector<8x128xf32>
    %45 = vector.extract_strided_slice %12 {offsets = [0, 32], sizes = [8, 32], strides = [1, 1]} : vector<8x128xf32> to vector<8x32xf32>
    %46 = arith.truncf %45 : vector<8x32xf32> to vector<8x32xbf16>
    %47 = vector.extract_strided_slice %13 {offsets = [0, 32], sizes = [8, 32], strides = [1, 1]} : vector<8x128xf32> to vector<8x32xf32>
    %48 = arith.truncf %47 : vector<8x32xf32> to vector<8x32xbf16>
    %49 = vector.extract_strided_slice %14 {offsets = [0, 32], sizes = [8, 32], strides = [1, 1]} : vector<8x128xf32> to vector<8x32xf32>
    %50 = arith.truncf %49 : vector<8x32xf32> to vector<8x32xbf16>
    "tpu.trace_start"() <{level = 10 : i32, message = "qd,kd->qk"}> : () -> ()
    %cst_20 = arith.constant dense<0.000000e+00> : vector<8x8xf32>
    %51 = tpu.matmul %46, %48, %cst_20 {dimension_numbers = #tpu.dot_dimension_numbers<[1], [1], [0], [0], [0, 0, 1, 0], [], []>} : vector<8x32xbf16>, vector<8x32xbf16>, vector<8x8xf32> -> vector<8x8xf32>
    "tpu.trace_stop"() : () -> ()
    %cst_21 = arith.constant 0.176776692 : f32
    %52 = vector.broadcast %cst_21 : f32 to vector<8x8xf32>
    %53 = arith.mulf %51, %52 : vector<8x8xf32>
    %54 = vector.broadcast %16 : vector<1x8xf32> to vector<8x8xf32>
    %55 = arith.addf %53, %54 : vector<8x8xf32>
    %cst_22 = arith.constant dense<0xFF800000> : vector<8xf32>
    %56 = vector.multi_reduction <maximumf>, %55, %cst_22 [1] : vector<8x8xf32> to vector<8xf32>
    %57 = vector.shape_cast %56 : vector<8xf32> to vector<8x1xf32>
    %58 = vector.broadcast %57 : vector<8x1xf32> to vector<8x8xf32>
    %59 = arith.subf %55, %58 : vector<8x8xf32>
    %60 = math.exp %59 : vector<8x8xf32>
    %cst_23 = arith.constant dense<0.000000e+00> : vector<8xf32>
    %61 = vector.multi_reduction <add>, %60, %cst_23 [1] : vector<8x8xf32> to vector<8xf32>
    %62 = vector.shape_cast %61 : vector<8xf32> to vector<8x1xf32>
    %63 = tpu.reciprocal %62 {approx = true} : vector<8x1xf32> -> vector<8x1xf32>
    %64 = vector.broadcast %63 : vector<8x1xf32> to vector<8x8xf32>
    %65 = arith.mulf %60, %64 : vector<8x8xf32>
    %66 = arith.truncf %65 : vector<8x8xf32> to vector<8x8xbf16>
    %cst_24 = arith.constant dense<0.000000e+00> : vector<8x32xf32>
    %67 = tpu.matmul %66, %50, %cst_24 {dimension_numbers = #tpu.dot_dimension_numbers<[1], [0], [0], [1], [0, 0, 1, 1], [], []>} : vector<8x8xbf16>, vector<8x32xbf16>, vector<8x32xf32> -> vector<8x32xf32>
    %68 = arith.truncf %67 : vector<8x32xf32> to vector<8x32xbf16>
    %69 = vector.extract_strided_slice %18 {offsets = [32, 0], sizes = [32, 128], strides = [1, 1]} : vector<128x128xbf16> to vector<32x128xbf16>
    %cst_25 = arith.constant dense<0.000000e+00> : vector<8x128xf32>
    %70 = tpu.matmul %68, %69, %cst_25 {dimension_numbers = #tpu.dot_dimension_numbers<[1], [0], [0], [1], [0, 0, 1, 1], [], []>} : vector<8x32xbf16>, vector<32x128xbf16>, vector<8x128xf32> -> vector<8x128xf32>
    %71 = arith.addf %44, %70 : vector<8x128xf32>
    %72 = vector.extract_strided_slice %12 {offsets = [0, 64], sizes = [8, 32], strides = [1, 1]} : vector<8x128xf32> to vector<8x32xf32>
    %73 = arith.truncf %72 : vector<8x32xf32> to vector<8x32xbf16>
    %74 = vector.extract_strided_slice %13 {offsets = [0, 64], sizes = [8, 32], strides = [1, 1]} : vector<8x128xf32> to vector<8x32xf32>
    %75 = arith.truncf %74 : vector<8x32xf32> to vector<8x32xbf16>
    %76 = vector.extract_strided_slice %14 {offsets = [0, 64], sizes = [8, 32], strides = [1, 1]} : vector<8x128xf32> to vector<8x32xf32>
    %77 = arith.truncf %76 : vector<8x32xf32> to vector<8x32xbf16>
    "tpu.trace_start"() <{level = 10 : i32, message = "qd,kd->qk"}> : () -> ()
    %cst_26 = arith.constant dense<0.000000e+00> : vector<8x8xf32>
    %78 = tpu.matmul %73, %75, %cst_26 {dimension_numbers = #tpu.dot_dimension_numbers<[1], [1], [0], [0], [0, 0, 1, 0], [], []>} : vector<8x32xbf16>, vector<8x32xbf16>, vector<8x8xf32> -> vector<8x8xf32>
    "tpu.trace_stop"() : () -> ()
    %cst_27 = arith.constant 0.176776692 : f32
    %79 = vector.broadcast %cst_27 : f32 to vector<8x8xf32>
    %80 = arith.mulf %78, %79 : vector<8x8xf32>
    %81 = vector.broadcast %16 : vector<1x8xf32> to vector<8x8xf32>
    %82 = arith.addf %80, %81 : vector<8x8xf32>
    %cst_28 = arith.constant dense<0xFF800000> : vector<8xf32>
    %83 = vector.multi_reduction <maximumf>, %82, %cst_28 [1] : vector<8x8xf32> to vector<8xf32>
    %84 = vector.shape_cast %83 : vector<8xf32> to vector<8x1xf32>
    %85 = vector.broadcast %84 : vector<8x1xf32> to vector<8x8xf32>
    %86 = arith.subf %82, %85 : vector<8x8xf32>
    %87 = math.exp %86 : vector<8x8xf32>
    %cst_29 = arith.constant dense<0.000000e+00> : vector<8xf32>
    %88 = vector.multi_reduction <add>, %87, %cst_29 [1] : vector<8x8xf32> to vector<8xf32>
    %89 = vector.shape_cast %88 : vector<8xf32> to vector<8x1xf32>
    %90 = tpu.reciprocal %89 {approx = true} : vector<8x1xf32> -> vector<8x1xf32>
    %91 = vector.broadcast %90 : vector<8x1xf32> to vector<8x8xf32>
    %92 = arith.mulf %87, %91 : vector<8x8xf32>
    %93 = arith.truncf %92 : vector<8x8xf32> to vector<8x8xbf16>
    %cst_30 = arith.constant dense<0.000000e+00> : vector<8x32xf32>
    %94 = tpu.matmul %93, %77, %cst_30 {dimension_numbers = #tpu.dot_dimension_numbers<[1], [0], [0], [1], [0, 0, 1, 1], [], []>} : vector<8x8xbf16>, vector<8x32xbf16>, vector<8x32xf32> -> vector<8x32xf32>
    %95 = arith.truncf %94 : vector<8x32xf32> to vector<8x32xbf16>
    %96 = vector.extract_strided_slice %18 {offsets = [64, 0], sizes = [32, 128], strides = [1, 1]} : vector<128x128xbf16> to vector<32x128xbf16>
    %cst_31 = arith.constant dense<0.000000e+00> : vector<8x128xf32>
    %97 = tpu.matmul %95, %96, %cst_31 {dimension_numbers = #tpu.dot_dimension_numbers<[1], [0], [0], [1], [0, 0, 1, 1], [], []>} : vector<8x32xbf16>, vector<32x128xbf16>, vector<8x128xf32> -> vector<8x128xf32>
    %98 = arith.addf %71, %97 : vector<8x128xf32>
    %99 = vector.extract_strided_slice %12 {offsets = [0, 96], sizes = [8, 32], strides = [1, 1]} : vector<8x128xf32> to vector<8x32xf32>
    %100 = arith.truncf %99 : vector<8x32xf32> to vector<8x32xbf16>
    %101 = vector.extract_strided_slice %13 {offsets = [0, 96], sizes = [8, 32], strides = [1, 1]} : vector<8x128xf32> to vector<8x32xf32>
    %102 = arith.truncf %101 : vector<8x32xf32> to vector<8x32xbf16>
    %103 = vector.extract_strided_slice %14 {offsets = [0, 96], sizes = [8, 32], strides = [1, 1]} : vector<8x128xf32> to vector<8x32xf32>
    %104 = arith.truncf %103 : vector<8x32xf32> to vector<8x32xbf16>
    "tpu.trace_start"() <{level = 10 : i32, message = "qd,kd->qk"}> : () -> ()
    %cst_32 = arith.constant dense<0.000000e+00> : vector<8x8xf32>
    %105 = tpu.matmul %100, %102, %cst_32 {dimension_numbers = #tpu.dot_dimension_numbers<[1], [1], [0], [0], [0, 0, 1, 0], [], []>} : vector<8x32xbf16>, vector<8x32xbf16>, vector<8x8xf32> -> vector<8x8xf32>
    "tpu.trace_stop"() : () -> ()
    %cst_33 = arith.constant 0.176776692 : f32
    %106 = vector.broadcast %cst_33 : f32 to vector<8x8xf32>
    %107 = arith.mulf %105, %106 : vector<8x8xf32>
    %108 = vector.broadcast %16 : vector<1x8xf32> to vector<8x8xf32>
    %109 = arith.addf %107, %108 : vector<8x8xf32>
    %cst_34 = arith.constant dense<0xFF800000> : vector<8xf32>
    %110 = vector.multi_reduction <maximumf>, %109, %cst_34 [1] : vector<8x8xf32> to vector<8xf32>
    %111 = vector.shape_cast %110 : vector<8xf32> to vector<8x1xf32>
    %112 = vector.broadcast %111 : vector<8x1xf32> to vector<8x8xf32>
    %113 = arith.subf %109, %112 : vector<8x8xf32>
    %114 = math.exp %113 : vector<8x8xf32>
    %cst_35 = arith.constant dense<0.000000e+00> : vector<8xf32>
    %115 = vector.multi_reduction <add>, %114, %cst_35 [1] : vector<8x8xf32> to vector<8xf32>
    %116 = vector.shape_cast %115 : vector<8xf32> to vector<8x1xf32>
    %117 = tpu.reciprocal %116 {approx = true} : vector<8x1xf32> -> vector<8x1xf32>
    %118 = vector.broadcast %117 : vector<8x1xf32> to vector<8x8xf32>
    %119 = arith.mulf %114, %118 : vector<8x8xf32>
    %120 = arith.truncf %119 : vector<8x8xf32> to vector<8x8xbf16>
    %cst_36 = arith.constant dense<0.000000e+00> : vector<8x32xf32>
    %121 = tpu.matmul %120, %104, %cst_36 {dimension_numbers = #tpu.dot_dimension_numbers<[1], [0], [0], [1], [0, 0, 1, 1], [], []>} : vector<8x8xbf16>, vector<8x32xbf16>, vector<8x32xf32> -> vector<8x32xf32>
    %122 = arith.truncf %121 : vector<8x32xf32> to vector<8x32xbf16>
    %123 = vector.extract_strided_slice %18 {offsets = [96, 0], sizes = [32, 128], strides = [1, 1]} : vector<128x128xbf16> to vector<32x128xbf16>
    %cst_37 = arith.constant dense<0.000000e+00> : vector<8x128xf32>
    %124 = tpu.matmul %122, %123, %cst_37 {dimension_numbers = #tpu.dot_dimension_numbers<[1], [0], [0], [1], [0, 0, 1, 1], [], []>} : vector<8x32xbf16>, vector<32x128xbf16>, vector<8x128xf32> -> vector<8x128xf32>
    %125 = arith.addf %98, %124 : vector<8x128xf32>
    %c0_38 = arith.constant 0 : index
    %c0_39 = arith.constant 0 : index
    %c0_40 = arith.constant 0 : index
    %126 = vector.load %arg9[%c0_38, %c0_39, %c0_40] : memref<1x1x128xf32, #tpu.memory_space<vmem>>, vector<1x1x128xf32>
    %127 = vector.shape_cast %126 : vector<1x1x128xf32> to vector<1x128xf32>
    %128 = vector.broadcast %127 : vector<1x128xf32> to vector<8x128xf32>
    %129 = arith.addf %125, %128 : vector<8x128xf32>
    %130 = arith.addf %129, %3 : vector<8x128xf32>
    %c0_41 = arith.constant 0 : index
    %c0_42 = arith.constant 0 : index
    %c0_43 = arith.constant 0 : index
    %131 = vector.load %arg10[%c0_41, %c0_42, %c0_43] : memref<1x1x128xf32, #tpu.memory_space<vmem>>, vector<1x1x128xf32>
    %132 = vector.shape_cast %131 : vector<1x1x128xf32> to vector<1x128xf32>
    %c0_44 = arith.constant 0 : index
    %c0_45 = arith.constant 0 : index
    %c0_46 = arith.constant 0 : index
    %133 = vector.load %arg11[%c0_44, %c0_45, %c0_46] : memref<1x1x128xf32, #tpu.memory_space<vmem>>, vector<1x1x128xf32>
    %134 = vector.shape_cast %133 : vector<1x1x128xf32> to vector<1x128xf32>
    %cst_47 = arith.constant dense<0.000000e+00> : vector<8xf32>
    %135 = vector.multi_reduction <add>, %130, %cst_47 [1] : vector<8x128xf32> to vector<8xf32>
    %136 = vector.shape_cast %135 : vector<8xf32> to vector<8x1xf32>
    %cst_48 = arith.constant 1.280000e+02 : f32
    %137 = vector.broadcast %cst_48 : f32 to vector<8x1xf32>
    %138 = arith.divf %136, %137 : vector<8x1xf32>
    %139 = vector.broadcast %138 : vector<8x1xf32> to vector<8x128xf32>
    %140 = arith.subf %130, %139 : vector<8x128xf32>
    %141 = arith.mulf %140, %140 : vector<8x128xf32>
    %cst_49 = arith.constant dense<0.000000e+00> : vector<8xf32>
    %142 = vector.multi_reduction <add>, %141, %cst_49 [1] : vector<8x128xf32> to vector<8xf32>
    %143 = vector.shape_cast %142 : vector<8xf32> to vector<8x1xf32>
    %cst_50 = arith.constant 1.280000e+02 : f32
    %144 = vector.broadcast %cst_50 : f32 to vector<8x1xf32>
    %145 = arith.divf %143, %144 : vector<8x1xf32>
    %146 = vector.broadcast %138 : vector<8x1xf32> to vector<8x128xf32>
    %147 = arith.subf %130, %146 : vector<8x128xf32>
    %cst_51 = arith.constant 9.99999996E-13 : f32
    %148 = vector.broadcast %cst_51 : f32 to vector<8x1xf32>
    %149 = arith.addf %145, %148 : vector<8x1xf32>
    %150 = math.rsqrt %149 : vector<8x1xf32>
    %151 = vector.broadcast %150 : vector<8x1xf32> to vector<8x128xf32>
    %152 = arith.mulf %147, %151 : vector<8x128xf32>
    %153 = vector.broadcast %132 : vector<1x128xf32> to vector<8x128xf32>
    %154 = arith.mulf %152, %153 : vector<8x128xf32>
    %155 = vector.broadcast %134 : vector<1x128xf32> to vector<8x128xf32>
    %156 = arith.addf %154, %155 : vector<8x128xf32>
    %157 = arith.truncf %156 : vector<8x128xf32> to vector<8x128xbf16>
    %c0_52 = arith.constant 0 : index
    %c0_53 = arith.constant 0 : index
    %c0_54 = arith.constant 0 : index
    %158 = vector.load %arg12[%c0_52, %c0_53, %c0_54] : memref<1x128x512xbf16, #tpu.memory_space<vmem>>, vector<1x128x512xbf16>
    %159 = vector.shape_cast %158 : vector<1x128x512xbf16> to vector<128x512xbf16>
    %cst_55 = arith.constant dense<0.000000e+00> : vector<8x512xf32>
    %160 = tpu.matmul %157, %159, %cst_55 {dimension_numbers = #tpu.dot_dimension_numbers<[1], [0], [0], [1], [0, 0, 1, 1], [], []>} : vector<8x128xbf16>, vector<128x512xbf16>, vector<8x512xf32> -> vector<8x512xf32>
    %c0_56 = arith.constant 0 : index
    %c0_57 = arith.constant 0 : index
    %c0_58 = arith.constant 0 : index
    %161 = vector.load %arg13[%c0_56, %c0_57, %c0_58] : memref<1x1x512xf32, #tpu.memory_space<vmem>>, vector<1x1x512xf32>
    %162 = vector.shape_cast %161 : vector<1x1x512xf32> to vector<1x512xf32>
    %163 = vector.broadcast %162 : vector<1x512xf32> to vector<8x512xf32>
    %164 = arith.addf %160, %163 : vector<8x512xf32>
    %165 = arith.mulf %164, %164 : vector<8x512xf32>
    %166 = arith.mulf %164, %165 : vector<8x512xf32>
    %cst_59 = arith.constant 4.471500e-02 : f32
    %167 = vector.broadcast %cst_59 : f32 to vector<8x512xf32>
    %168 = arith.mulf %167, %166 : vector<8x512xf32>
    %169 = arith.addf %164, %168 : vector<8x512xf32>
    %cst_60 = arith.constant 0.797884583 : f32
    %170 = vector.broadcast %cst_60 : f32 to vector<8x512xf32>
    %171 = arith.mulf %170, %169 : vector<8x512xf32>
    %172 = math.tanh %171 : vector<8x512xf32>
    %cst_61 = arith.constant 1.000000e+00 : f32
    %173 = vector.broadcast %cst_61 : f32 to vector<8x512xf32>
    %174 = arith.addf %173, %172 : vector<8x512xf32>
    %cst_62 = arith.constant 5.000000e-01 : f32
    %175 = vector.broadcast %cst_62 : f32 to vector<8x512xf32>
    %176 = arith.mulf %175, %174 : vector<8x512xf32>
    %177 = arith.mulf %164, %176 : vector<8x512xf32>
    %178 = arith.truncf %177 : vector<8x512xf32> to vector<8x512xbf16>
    %c0_63 = arith.constant 0 : index
    %c0_64 = arith.constant 0 : index
    %c0_65 = arith.constant 0 : index
    %179 = vector.load %arg14[%c0_63, %c0_64, %c0_65] : memref<1x512x128xbf16, #tpu.memory_space<vmem>>, vector<1x512x128xbf16>
    %180 = vector.shape_cast %179 : vector<1x512x128xbf16> to vector<512x128xbf16>
    %cst_66 = arith.constant dense<0.000000e+00> : vector<8x128xf32>
    %181 = tpu.matmul %178, %180, %cst_66 {dimension_numbers = #tpu.dot_dimension_numbers<[1], [0], [0], [1], [0, 0, 1, 1], [], []>} : vector<8x512xbf16>, vector<512x128xbf16>, vector<8x128xf32> -> vector<8x128xf32>
    %c0_67 = arith.constant 0 : index
    %c0_68 = arith.constant 0 : index
    %c0_69 = arith.constant 0 : index
    %182 = vector.load %arg15[%c0_67, %c0_68, %c0_69] : memref<1x1x128xf32, #tpu.memory_space<vmem>>, vector<1x1x128xf32>
    %183 = vector.shape_cast %182 : vector<1x1x128xf32> to vector<1x128xf32>
    %184 = vector.broadcast %183 : vector<1x128xf32> to vector<8x128xf32>
    %185 = arith.addf %181, %184 : vector<8x128xf32>
    %186 = arith.addf %185, %156 : vector<8x128xf32>
    %c0_70 = arith.constant 0 : index
    %c0_71 = arith.constant 0 : index
    %c0_72 = arith.constant 0 : index
    %187 = vector.load %arg16[%c0_70, %c0_71, %c0_72] : memref<1x1x128xf32, #tpu.memory_space<vmem>>, vector<1x1x128xf32>
    %188 = vector.shape_cast %187 : vector<1x1x128xf32> to vector<1x128xf32>
    %c0_73 = arith.constant 0 : index
    %c0_74 = arith.constant 0 : index
    %c0_75 = arith.constant 0 : index
    %189 = vector.load %arg17[%c0_73, %c0_74, %c0_75] : memref<1x1x128xf32, #tpu.memory_space<vmem>>, vector<1x1x128xf32>
    %190 = vector.shape_cast %189 : vector<1x1x128xf32> to vector<1x128xf32>
    %cst_76 = arith.constant dense<0.000000e+00> : vector<8xf32>
    %191 = vector.multi_reduction <add>, %186, %cst_76 [1] : vector<8x128xf32> to vector<8xf32>
    %192 = vector.shape_cast %191 : vector<8xf32> to vector<8x1xf32>
    %cst_77 = arith.constant 1.280000e+02 : f32
    %193 = vector.broadcast %cst_77 : f32 to vector<8x1xf32>
    %194 = arith.divf %192, %193 : vector<8x1xf32>
    %195 = vector.broadcast %194 : vector<8x1xf32> to vector<8x128xf32>
    %196 = arith.subf %186, %195 : vector<8x128xf32>
    %197 = arith.mulf %196, %196 : vector<8x128xf32>
    %cst_78 = arith.constant dense<0.000000e+00> : vector<8xf32>
    %198 = vector.multi_reduction <add>, %197, %cst_78 [1] : vector<8x128xf32> to vector<8xf32>
    %199 = vector.shape_cast %198 : vector<8xf32> to vector<8x1xf32>
    %cst_79 = arith.constant 1.280000e+02 : f32
    %200 = vector.broadcast %cst_79 : f32 to vector<8x1xf32>
    %201 = arith.divf %199, %200 : vector<8x1xf32>
    %202 = vector.broadcast %194 : vector<8x1xf32> to vector<8x128xf32>
    %203 = arith.subf %186, %202 : vector<8x128xf32>
    %cst_80 = arith.constant 9.99999996E-13 : f32
    %204 = vector.broadcast %cst_80 : f32 to vector<8x1xf32>
    %205 = arith.addf %201, %204 : vector<8x1xf32>
    %206 = math.rsqrt %205 : vector<8x1xf32>
    %207 = vector.broadcast %206 : vector<8x1xf32> to vector<8x128xf32>
    %208 = arith.mulf %203, %207 : vector<8x128xf32>
    %209 = vector.broadcast %188 : vector<1x128xf32> to vector<8x128xf32>
    %210 = arith.mulf %208, %209 : vector<8x128xf32>
    %211 = vector.broadcast %190 : vector<1x128xf32> to vector<8x128xf32>
    %212 = arith.addf %210, %211 : vector<8x128xf32>
    %c0_81 = arith.constant 0 : index
    %c0_82 = arith.constant 0 : index
    %213 = vector.load %arg21[%c0_81, %c0_82] : memref<8x128xf32, #tpu.memory_space<vmem>>, vector<8x128xf32>
    tpu.vector_store %arg21[%c0_81, %c0_82], %212 {strides = array<i32>} : memref<8x128xf32, #tpu.memory_space<vmem>>, vector<8x128xf32>,
    %c1_i32 = arith.constant 1 : i32
    %214 = arith.cmpi eq, %arg1, %c1_i32 : i32
    %215 = arith.extui %214 : i1 to i32
    %c0_i32_83 = arith.constant 0 : i32
    %216 = arith.cmpi ne, %215, %c0_i32_83 : i32
    scf.if %216 {
      %c0_84 = arith.constant 0 : index
      %c0_85 = arith.constant 0 : index
      %217 = vector.load %arg18[%c0_84, %c0_85] : memref<128x128xf32, #tpu.memory_space<vmem>>, vector<128x128xf32>
      %cst_86 = arith.constant dense<0.000000e+00> : vector<8x128xf32>
      %218 = tpu.matmul %212, %217, %cst_86 {dimension_numbers = #tpu.dot_dimension_numbers<[1], [0], [0], [1], [0, 0, 1, 1], [], []>} : vector<8x128xf32>, vector<128x128xf32>, vector<8x128xf32> -> vector<8x128xf32>
      %c0_87 = arith.constant 0 : index
      %c0_88 = arith.constant 0 : index
      %219 = vector.load %arg19[%c0_87, %c0_88] : memref<1x128xf32, #tpu.memory_space<vmem>>, vector<1x128xf32>
      %220 = vector.broadcast %219 : vector<1x128xf32> to vector<8x128xf32>
      %221 = arith.addf %218, %220 : vector<8x128xf32>
      %c0_89 = arith.constant 0 : index
      %c0_90 = arith.constant 0 : index
      %222 = vector.load %arg20[%c0_89, %c0_90] : memref<8x128xf32, #tpu.memory_space<vmem>>, vector<8x128xf32>
      tpu.vector_store %arg20[%c0_89, %c0_90], %221 {strides = array<i32>} : memref<8x128xf32, #tpu.memory_space<vmem>>, vector<8x128xf32>,
    } else {
    }
    return
  }
  func.func @transform_0(%arg0: i32, %arg1: i32) -> (i32, i32) {
    %c0_i32 = arith.constant 0 : i32
    %c0_i32_0 = arith.constant 0 : i32
    return %arg0, %c0_i32 : i32, i32
  }
  func.func @transform_1(%arg0: i32, %arg1: i32) -> (i32, i32, i32) {
    %c0_i32 = arith.constant 0 : i32
    %c0_i32_0 = arith.constant 0 : i32
    %c0_i32_1 = arith.constant 0 : i32
    return %arg0, %c0_i32, %c0_i32_0 : i32, i32, i32
  }
  func.func @transform_2(%arg0: i32, %arg1: i32) -> (i32, i32) {
    %c0_i32 = arith.constant 0 : i32
    %c0_i32_0 = arith.constant 0 : i32
    %c0_i32_1 = arith.constant 0 : i32
    return %c0_i32, %c0_i32_0 : i32, i32
  }
  func.func @transform_3(%arg0: i32, %arg1: i32) -> (i32, i32) {
    %c0_i32 = arith.constant 0 : i32
    %c0_i32_0 = arith.constant 0 : i32
    %c0_i32_1 = arith.constant 0 : i32
    return %c0_i32, %c0_i32_0 : i32, i32
  }
  func.func @transform_4(%arg0: i32, %arg1: i32) -> (i32, i32, i32) {
    %c0_i32 = arith.constant 0 : i32
    %c0_i32_0 = arith.constant 0 : i32
    %c0_i32_1 = arith.constant 0 : i32
    return %arg1, %c0_i32, %c0_i32_0 : i32, i32, i32
  }
  func.func @transform_5(%arg0: i32, %arg1: i32) -> (i32, i32, i32) {
    %c0_i32 = arith.constant 0 : i32
    %c0_i32_0 = arith.constant 0 : i32
    %c0_i32_1 = arith.constant 0 : i32
    return %arg1, %c0_i32, %c0_i32_0 : i32, i32, i32
  }
  func.func @transform_6(%arg0: i32, %arg1: i32) -> (i32, i32, i32) {
    %c0_i32 = arith.constant 0 : i32
    %c0_i32_0 = arith.constant 0 : i32
    %c0_i32_1 = arith.constant 0 : i32
    return %arg1, %c0_i32, %c0_i32_0 : i32, i32, i32
  }
  func.func @transform_7(%arg0: i32, %arg1: i32) -> (i32, i32, i32) {
    %c0_i32 = arith.constant 0 : i32
    %c0_i32_0 = arith.constant 0 : i32
    %c0_i32_1 = arith.constant 0 : i32
    return %arg1, %c0_i32, %c0_i32_0 : i32, i32, i32
  }
  func.func @transform_8(%arg0: i32, %arg1: i32) -> (i32, i32, i32) {
    %c0_i32 = arith.constant 0 : i32
    %c0_i32_0 = arith.constant 0 : i32
    %c0_i32_1 = arith.constant 0 : i32
    return %arg1, %c0_i32, %c0_i32_0 : i32, i32, i32
  }
  func.func @transform_9(%arg0: i32, %arg1: i32) -> (i32, i32, i32) {
    %c0_i32 = arith.constant 0 : i32
    %c0_i32_0 = arith.constant 0 : i32
    %c0_i32_1 = arith.constant 0 : i32
    return %arg1, %c0_i32, %c0_i32_0 : i32, i32, i32
  }
  func.func @transform_10(%arg0: i32, %arg1: i32) -> (i32, i32, i32) {
    %c0_i32 = arith.constant 0 : i32
    %c0_i32_0 = arith.constant 0 : i32
    %c0_i32_1 = arith.constant 0 : i32
    return %arg1, %c0_i32, %c0_i32_0 : i32, i32, i32
  }
  func.func @transform_11(%arg0: i32, %arg1: i32) -> (i32, i32, i32) {
    %c0_i32 = arith.constant 0 : i32
    %c0_i32_0 = arith.constant 0 : i32
    %c0_i32_1 = arith.constant 0 : i32
    return %arg1, %c0_i32, %c0_i32_0 : i32, i32, i32
  }
  func.func @transform_12(%arg0: i32, %arg1: i32) -> (i32, i32, i32) {
    %c0_i32 = arith.constant 0 : i32
    %c0_i32_0 = arith.constant 0 : i32
    %c0_i32_1 = arith.constant 0 : i32
    return %arg1, %c0_i32, %c0_i32_0 : i32, i32, i32
  }
  func.func @transform_13(%arg0: i32, %arg1: i32) -> (i32, i32, i32) {
    %c0_i32 = arith.constant 0 : i32
    %c0_i32_0 = arith.constant 0 : i32
    %c0_i32_1 = arith.constant 0 : i32
    return %arg1, %c0_i32, %c0_i32_0 : i32, i32, i32
  }
  func.func @transform_14(%arg0: i32, %arg1: i32) -> (i32, i32, i32) {
    %c0_i32 = arith.constant 0 : i32
    %c0_i32_0 = arith.constant 0 : i32
    %c0_i32_1 = arith.constant 0 : i32
    return %arg1, %c0_i32, %c0_i32_0 : i32, i32, i32
  }
  func.func @transform_15(%arg0: i32, %arg1: i32) -> (i32, i32, i32) {
    %c0_i32 = arith.constant 0 : i32
    %c0_i32_0 = arith.constant 0 : i32
    %c0_i32_1 = arith.constant 0 : i32
    return %arg1, %c0_i32, %c0_i32_0 : i32, i32, i32
  }
  func.func @transform_16(%arg0: i32, %arg1: i32) -> (i32, i32) {
    %c0_i32 = arith.constant 0 : i32
    %c0_i32_0 = arith.constant 0 : i32
    %c0_i32_1 = arith.constant 0 : i32
    return %c0_i32, %c0_i32_0 : i32, i32
  }
  func.func @transform_17(%arg0: i32, %arg1: i32) -> (i32, i32) {
    %c0_i32 = arith.constant 0 : i32
    %c0_i32_0 = arith.constant 0 : i32
    %c0_i32_1 = arith.constant 0 : i32
    return %c0_i32, %c0_i32_0 : i32, i32
  }
  func.func @transform_18(%arg0: i32, %arg1: i32) -> (i32, i32) {
    %c0_i32 = arith.constant 0 : i32
    %c0_i32_0 = arith.constant 0 : i32
    return %arg0, %c0_i32 : i32, i32
  }
}

</mosaic_0001>

<bundles_post_ra>
// kernel: tpu_custom_call.1
= control target key start
LH: loop header
LB: loop body
LE: loop exit
PB: predicated region body
PF: predicated region fallthrough
CT: control target
= control target key end

     0   :  { %s5204_s0 = inlined_call_operand.hbm [shape: f32[16,128], index: 0, kind: input, shape index: {}]   ;;  %s5205_s1 = inlined_call_operand.hbm [shape: f32[2,1,8], index: 1, kind: input, shape index: {}]   ;;  %s5206_s2 = inlined_call_operand.hbm [shape: f32[1,128], index: 2, kind: input, shape index: {}]   ;;  %s5207_s3 = inlined_call_operand.hbm [shape: f32[1,128], index: 3, kind: input, shape index: {}]   ;;  %s5208_s4 = inlined_call_operand.hbm [shape: bf16[2,128,384], index: 4, kind: input, shape index: {}]   ;;  %s5209_s5 = inlined_call_operand.vmem [shape: f32[2,1,384], index: 5, kind: input, shape index: {}]   ;;  %s5210_s6 = inlined_call_operand.hbm [shape: bf16[2,128,128], index: 6, kind: input, shape index: {}]   ;;  %s5211_s7 = inlined_call_operand.vmem [shape: f32[2,1,128], index: 7, kind: input, shape index: {}]   ;;  %s5212_s8 = inlined_call_operand.hbm [shape: f32[2,1,128], index: 8, kind: input, shape index: {}]   ;;  %s5213_s9 = inlined_call_operand.hbm [shape: f32[2,1,128], index: 9, kind: input, shape index: {}]   ;;  %s5214_s10 = inlined_call_operand.hbm [shape: bf16[2,128,512], index: 10, kind: input, shape index: {}]   ;;  %s5215_s11 = inlined_call_operand.vmem [shape: f32[2,1,512], index: 11, kind: input, shape index: {}]   ;;  %s5216_s12 = inlined_call_operand.hbm [shape: bf16[2,512,128], index: 12, kind: input, shape index: {}]   ;;  %s5217_s13 = inlined_call_operand.vmem [shape: f32[2,1,128], index: 13, kind: input, shape index: {}]   ;;  %s5218_s14 = inlined_call_operand.vmem [shape: f32[2,1,128], index: 14, kind: input, shape index: {}]   ;;  %s5219_s15 = inlined_call_operand.vmem [shape: f32[2,1,128], index: 15, kind: input, shape index: {}]   ;;  %s5220_s16 = inlined_call_operand.hbm [shape: f32[128,128], index: 16, kind: input, shape index: {}]   ;;  %s5221_s17 = inlined_call_operand.vmem [shape: f32[1,128], index: 17, kind: input, shape index: {}]   ;;  %s5222_s18 = inlined_call_operand.hbm [shape: f32[16,128], index: 18, kind: output, shape index: {}]  }
   0x1   :  { %5256 = sst [smem:[#allocation50_spill]] %s5204_s0 }
   0x2   :  { %5257 = sst [smem:[#allocation51_spill]] %s5205_s1 }
   0x3   :  { %5258 = sst [smem:[#allocation52_spill]] %s5206_s2 }
   0x4   :  { %5259 = sst [smem:[#allocation53_spill]] %s5207_s3 }
   0x5   :  { %5260 = sst [smem:[#allocation54_spill]] %s5208_s4 }
   0x6   :  { %5261 = sst [smem:[#allocation55_spill]] %s5209_s5 }
   0x7   :  { %5262 = sst [smem:[#allocation56_spill]] %s5210_s6 }
   0x8   :  { %5263 = sst [smem:[#allocation57_spill]] %s5211_s7 }
   0x9   :  { %5264 = sst [smem:[#allocation58_spill]] %s5212_s8 }
   0xa   :  { %5265 = sst [smem:[#allocation59_spill]] %s5213_s9 }
   0xb   :  { %5266 = sst [smem:[#allocation60_spill]] %s5214_s10 }
   0xc   :  { %5267 = sst [smem:[#allocation61_spill]] %s5215_s11 }
   0xd   :  { %5268 = sst [smem:[#allocation62_spill]] %s5216_s12 }
   0xe   :  { %5269 = sst [smem:[#allocation63_spill]] %s5217_s13 }
   0xf   :  { %5270 = sst [smem:[#allocation64_spill]] %s5218_s14 }
  0x10   :  { %5271 = sst [smem:[#allocation65_spill]] %s5219_s15 }
  0x11   :  { %5272 = sst [smem:[#allocation66_spill]] %s5220_s16 }
  0x12   :  { %5273 = sst [smem:[#allocation67_spill]] %s5221_s17 }
  0x13   :  { %5274 = sst [smem:[#allocation68_spill]] %s5222_s18 }
  0x14   :  { %23 = vsyncpa [#allocation4], 0 }
  0x15   :  { %25 = vsyncpa [#allocation4 + $0x1], 0 }
  0x16   :  { %26 = vsyncpa [#allocation7], 0 }
  0x17   :  { %28 = vsyncpa [#allocation7 + $0x1], 0 }
  0x18   :  { %29 = vsyncpa [#allocation10], 0 }
  0x19   :  { %30 = vsyncpa [#allocation5], 0 }
  0x1a   :  { %32 = vsyncpa [#allocation5 + $0x1], 0  ;;  %s4449_s27 = smov 0   ;;  %s4451_s28 = smov 0  }
  0x1b   :  { %s4453_s29 = smov 0   ;;  %s4455_s30 = smov 0  }
  0x1c   :  { %s4457_s0 = smov 0   ;;  %s4459_s19 = smov 0  }
  0x1d   :  { %s4461_s1 = smov 0   ;;  %s4463_s20 = smov 0  }
  0x1e   :  { %s4465_s21 = smov 0   ;;  %s4467_s22 = smov 0  }
  0x1f   :  { %s4469_s2 = smov 0  }
  0x20 LB: > { %5275 = sst [smem:[#allocation31_spill]] %s4288_s28  ;;  %s4503_s23 = sadd.s32 4294967295, %s4324_s2   ;;  %s4324_s2 = sphi %s4469_s2, %s38_s2   ;;  %s4320_s22 = sphi %s4467_s22, %s5373_s22   ;;  %s4316_s21 = sphi %s4465_s21, %s5372_s21   ;;  %s4312_s20 = sphi %s4463_s20, %s5371_s20   ;;  %s4308_s1 = sphi %s4461_s1, %s5370_s1   ;;  %s4304_s19 = sphi %s4459_s19, %s5369_s19   ;;  %s4300_s0 = sphi %s4457_s0, %s5368_s0   ;;  %s4296_s30 = sphi %s4455_s30, %s5367_s30   ;;  %s4292_s29 = sphi %s4453_s29, %s5366_s29   ;;  %s4288_s28 = sphi %s4451_s28, %s5365_s28   ;;  %s4284_s27 = sphi %s4449_s27, %s5364_s27  }
  0x21   : > { %5276 = sst [smem:[#allocation32_spill]] %s4292_s29  ;;  %p164_p0 = scmp.ne.s32.totalorder %s4288_s28, %s4284_s27 }
  0x22   : > { %5277 = sst [smem:[#allocation33_spill]] %s4296_s30  ;;  %p5227_p1 = scmp.eq.s32.totalorder %s4503_s23, 0 }
  0x23   : > { %5278 = sst [smem:[#allocation34_spill]] %s4300_s0  ;;  %p3134_p2 = scmp.ge.s32.totalorder %s4324_s2, 1 }
  0x24   : > { %5279 = sst [smem:[#allocation35_spill]] %s4304_s19  ;;  %p529_p3 = scmp.lt.s32.totalorder %s4324_s2, 5 }
  0x25   : > { %5280 = sst [smem:[#allocation36_spill]] %s4308_s1  ;;  %p4511_p4 = por %p164_p0, %p5227_p1 }
  0x26   : > { %5281 = sst [smem:[#allocation37_spill]] %s4312_s20  ;;  %p4515_p5 = pnand %p3134_p2, %p529_p3 }
  0x27   : > { %5282 = sst [smem:[#allocation38_spill]] %s4316_s21  ;;  %s4326_s26 = smov [#allocation8]  }
  0x28   : > { %5283 = sst [smem:[#allocation39_spill]] %s4320_s22  ;;  %s542_s18 = sshll.u32 %s4326_s26, 4  ;;  %s543_s18 = int_to_ptr.vmem [resolvable:$true] %s542_s18 }
  0x29   : > { %5284 = sst [smem:[#allocation40_spill]] %s4324_s2  ;;  %p3558_p6 = pneg %p4515_p5 }
  0x2a   : > { %5285 = sst [smem:[#allocation41_spill]] %s4503_s23  ;;  %s3873_s20 = scalar_lea.vmem %s543_s18, 16 }
  0x2b   : > { %s5286_s24 = scalar_select %p4511_p4, 1, 0 }
  0x2c   : > { %s5288_s25 = scalar_select %p4515_p5, 1, 0 }
  0x2d   : > { %5287 = sst [smem:[#allocation42_spill]] %s5286_s24  ;;  %p4523_p7 = pnand %p3558_p6, %p5227_p1 }
  0x2e   : > { %p3874_p9 = scmp.ne.s32.totalorder %s543_s18, %s3873_s20  ;;  %s3880_s17 = scalar_lea.vmem %s543_s18, 32 }
  0x2f   : > { %p5224_p8 = pneg %p4523_p7  ;;  %p3881_p12 = scmp.lt.s32.totalorder %s543_s18, %s543_s18 }
  0x30   : > { %p3882_p13 = scmp.lt.s32.totalorder %s3880_s17, %s3873_s20 }
  0x31   : > { %p3876_p10 = pnand %p3874_p9, %p5224_p8 }
  0x32   : > { %p3883_p0 = por %p3882_p13, %p3881_p12 }
  0x33   : > { %p3877_p11 = pneg %p3876_p10 }
  0x35   : > { %p3884_p2 = pnand %p3883_p0, %p3877_p11 }
  0x37   : > { %3887 = shalt.err (!%p3884_p2)
}
  0x38   : > { %s5290_s14 = sld [smem:[#allocation52_spill]]  ;;  %s3133_s17 = sadd.s32 4294967294, %s4324_s2  }
  0x39   : > { %s47_s15 = sadd.s32 1, %s4316_s21  ;;  %s50_s20 = sadd.s32 1, %s4320_s22 }
  0x3a   : > { %p48_p3 = scmp.ge.s32.totalorder %s47_s15, 2  ;;  %s57_s26 = sadd.s32 1, %s4304_s19 }
  0x3b   : > { %p5225_p6 = scmp.ne.s32.totalorder %s4304_s19, %s4300_s0  ;;  %p65_p9 = scmp.eq.s32.totalorder %s4324_s2, 0 }
  0x3c   : > { %s5375_s15 = smov (%p48_p3, %s47_s15), 0  ;;  %s5377_s20 = smov (!%p48_p3, %s50_s20), %s4320_s22 }
  0x3d   : > { %5291 = sst [smem:[#allocation43_spill]] %s5375_s15  ;;  %p4552_p10 = por %p65_p9, %p5225_p6 }
  0x3e   : > { %3561 = dma.hbm_to_vmem [thread:$0]  (!%p4523_p7), %s5290_s14, 16, %s543_s18, [#allocation7]  }
  0x3f   : > { %p5229_p11 = scmp.ne.s32.totalorder %s4300_s0, %s4296_s30  ;;  %p52_p12 = scmp.ge.s32.totalorder %s5377_s20, 2 }
  0x40   : > { %s148_s18 = ssub.s32 %s4316_s21, %s5375_s15  ;;  %s151_s5 = sadd.s32 1, %s4292_s29 }
  0x41   : > { %p4565_p13 = por %p5227_p1, %p5229_p11  ;;  %p149_p0 = scmp.eq.s32.totalorder %s148_s18, 0 }
  0x42   : > { %s5379_s20 = smov (%p52_p12, %s5377_s20), 0  ;;  %p158_p2 = scmp.ne.s32.totalorder %s4292_s29, %s4288_s28 }
  0x43   : > { %s5293_s11 = scalar_select %p4565_p13, 1, 0 }
  0x44   : > { %5295 = sst [smem:[#allocation45_spill]] %s5379_s20  ;;  %s54_s13 = ssub.s32 %s4320_s22, %s5379_s20 }
  0x45   : > { %5294 = sst [smem:[#allocation44_spill]] %s5293_s11  ;;  %p516_p3 = scmp.eq.s32.totalorder %s4503_s23, 3 }
  0x46   : > { %p55_p8 = scmp.eq.s32.totalorder %s54_s13, 0  ;;  %p4579_p6 = por %p158_p2, %p65_p9 }
  0x47   : > { %s4584_s7 = scalar_select %p149_p0, %s4292_s29, %s151_s5  }
  0x48   : > { %s4587_s18 = scalar_select %p55_p8, %s4304_s19, %s57_s26  }
  0x49   : > { %5297 = sst [smem:[#allocation46_spill]] %s4584_s7  ;;  %p5299_p12 = scmp.ne.s32.totalorder %s4304_s19, %s4300_s0 }
  0x4a   : > { %5298 = sst [smem:[#allocation47_spill]] %s4587_s18  ;;  %p522_p11 = scmp.eq.s32.totalorder %s3133_s17, 3 }
  0x4b   : > { %p4592_p1 = por %p516_p3, %p5299_p12  ;;  %p3600_p4 = scmp.lt.s32.totalorder %s4324_s2, 4 }
  0x4c   : > { %p5302_p13 = scmp.ne.s32.totalorder %s4300_s0, %s4296_s30  ;;  %s582_s24 = sand.u32 1, %s4304_s19  }
  0x4d   : > { %s5300_s1 = scalar_select %p4592_p1, 1, 0 }
  0x4e   : > { %p4601_p5 = por %p522_p11, %p5302_p13  ;;  %s3140_s28 = sshll.u32 %s4320_s22, 7 }
  0x4f   : > { %5301 = sst [smem:[#allocation48_spill]] %s5300_s1  ;;  %s3139_s11 = sshll.u32 %s582_s24, 3 }
  0x50   : > { %s5303_s13 = scalar_select %p4601_p5, 1, 0 }
  0x51   : > { %s5305_s26 = sld [smem:[#allocation50_spill]]  ;;  %p4614_p8 = pnand %p3600_p4, %p4552_p10 }
  0x52   : > { %5304 = sst [smem:[#allocation49_spill]] %s5303_s13  ;;  %s584_s17 = scalar_lea.vmem [#allocation3], %s3139_s11 }
  0x53   : > { %s591_s20 = sshll.u32 %s584_s17, 4  ;;  %s5307_s30 = sand.u32 1, %s4324_s2   ;;  %s592_s20 = int_to_ptr.vmem [resolvable:$true] %s591_s20 }
  0x54   : > { %s4620_s13 = scalar_lea.sflag [#allocation4], %s5307_s30  ;;  %p3890_p9 = pneg %p4614_p8 }
  0x55   : > { %s3901_s19 = scalar_lea.vmem %s592_s20, 128  ;;  %s4327_s7 = smov [#allocation3]  }
  0x56   : > { %p3902_p11 = scmp.ne.s32.totalorder %s592_s20, %s3901_s19 }
  0x57   : > { %s589_s18 = scalar_lea.hbm %s5305_s26, %s3140_s28  ;;  %s3906_s28 = sshll.u32 %s4327_s7, 4  ;;  %s3907_s28 = int_to_ptr.vmem [resolvable:$false] %s3906_s28 }
  0x58   : > { %p3904_p13 = pnand %p3902_p11, %p3890_p9  ;;  %s3908_s14 = scalar_lea.vmem %s3907_s28, 256 }
  0x59   : > { %p3909_p10 = scmp.lt.s32.totalorder %s592_s20, %s3907_s28  ;;  %p3910_p2 = scmp.lt.s32.totalorder %s3908_s14, %s3901_s19 }
  0x5a   : > { %p3905_p0 = pneg %p3904_p13 }
  0x5b   : > { %p3911_p3 = por %p3910_p2, %p3909_p10 }
  0x5d   : > { %p3912_p12 = pnand %p3911_p3, %p3905_p0 }
  0x5f   : > { %3915 = shalt.err (!%p3912_p12)
}
  0x60   : > { %3571 = dma.hbm_to_vmem [thread:$0]  (!%p4614_p8), %s589_s18, 128, %s592_s20, %s4620_s13  }
  0x61   : > { %p4634_p11 = pnand %p3600_p4, %p4579_p6  ;;  %s3141_s30 = sshll.u32 %s4320_s22, 4 }
  0x62   : > { %s601_s19 = scalar_lea.vmem [#allocation6], %s582_s24  ;;  %s5309_s7 = sld [smem:[#allocation51_spill]] }
  0x63   : > { %s608_s5 = sshll.u32 %s601_s19, 4  ;;  %s4643_s14 = sand.u32 1, %s4292_s29   ;;  %s609_s5 = int_to_ptr.vmem [resolvable:$true] %s608_s5 }
  0x64   : > { %s5310_s1 = sand.u32 1, %s4324_s2   ;;  %s3929_s20 = scalar_lea.vmem %s609_s5, 16 }
  0x65   : > { %s4647_s0 = scalar_lea.sflag [#allocation7], %s5310_s1  ;;  %p3930_p13 = scmp.ne.s32.totalorder %s609_s5, %s3929_s20 }
  0x66   : > { %s4328_s15 = smov [#allocation6]  }
  0x67   : > { %p3932_p4 = pnand %p3930_p13, %p3890_p9  ;;  %s3934_s18 = sshll.u32 %s4328_s15, 4  ;;  %s3935_s18 = int_to_ptr.vmem [resolvable:$false] %s3934_s18 }
  0x68   : > { %s606_s28 = scalar_lea.hbm %s5309_s7, %s3141_s30  ;;  %s3936_s24 = scalar_lea.vmem %s3935_s18, 32 }
  0x69   : > { %p3933_p6 = pneg %p3932_p4  ;;  %p3937_p0 = scmp.lt.s32.totalorder %s609_s5, %s3935_s18 }
  0x6a   : > { %p3938_p10 = scmp.lt.s32.totalorder %s3936_s24, %s3929_s20 }
  0x6c   : > { %p3939_p2 = por %p3938_p10, %p3937_p0 }
  0x6e   : > { %p3940_p3 = pnand %p3939_p2, %p3933_p6 }
  0x70   : > { %3943 = shalt.err (!%p3940_p3)
}
  0x71   : > { %3574 = dma.hbm_to_vmem [thread:$0]  (!%p4614_p8), %s606_s28, 16, %s609_s5, %s4647_s0  }
  0x72   : > { %s3524_s1 = smul.u32 192, %s4643_s14  ;;  %s3143_s19 = sshll.u32 %s4643_s14, 6 }
  0x73   : > { %s3525_s30 = smul.u32 3072, %s4316_s21  ;;  %s5311_s4 = sld [smem:[#allocation54_spill]] }
  0x74   : > { %s619_s15 = scalar_lea.vmem [#allocation11], %s3524_s1  ;;  %p4663_p9 = pneg %p4634_p11 }
  0x75   : > { %s626_s20 = sshll.u32 %s619_s15, 4  ;;  %s4329_s5 = smov [#allocation11]   ;;  %s627_s20 = int_to_ptr.vmem [resolvable:$true] %s626_s20 }
  0x76   : > { %s3957_s23 = scalar_lea.vmem %s627_s20, 3072  ;;  %s3962_s28 = sshll.u32 %s4329_s5, 4  ;;  %s3963_s28 = int_to_ptr.vmem [resolvable:$false] %s3962_s28 }
  0x77   : > { %p3958_p12 = scmp.ne.s32.totalorder %s627_s20, %s3957_s23  ;;  %s3964_s24 = scalar_lea.vmem %s3963_s28, 6144 }
  0x78   : > { %p3965_p4 = scmp.lt.s32.totalorder %s627_s20, %s3963_s28  ;;  %p3966_p6 = scmp.lt.s32.totalorder %s3964_s24, %s3957_s23 }
  0x79   : > { %s625_s7 = scalar_lea.hbm %s5311_s4, %s3525_s30  ;;  %p3960_p8 = pnand %p3958_p12, %p4663_p9 }
  0x7a   : > { %p3967_p0 = por %p3966_p6, %p3965_p4 }
  0x7b   : > { %p3961_p13 = pneg %p3960_p8 }
  0x7d   : > { %p3968_p10 = pnand %p3967_p0, %p3961_p13 }
  0x7f   : > { %3971 = shalt.err (!%p3968_p10)
}
  0x80   : > { %s4330_s1 = smov 192   ;;  %s4331_s30 = smov 12  }
  0x81   : > { %3577 = dma.hbm_to_vmem [thread:$0]  (!%p4634_p11), %s625_s7, 3072, %s627_s20, %s4620_s13, %s4330_s1, %s4330_s1, %s4331_s30  }
  0x82   : > { %s3288_s26 = sshll.u32 %s4316_s21, 10  ;;  %s647_s17 = scalar_lea.vmem [#allocation12], %s3143_s19 }
  0x83   : > { %s654_s15 = sshll.u32 %s647_s17, 4  ;;  %s5313_s6 = sld [smem:[#allocation56_spill]]  ;;  %s655_s15 = int_to_ptr.vmem [resolvable:$true] %s654_s15 }
  0x84   : > { %s3985_s23 = scalar_lea.vmem %s655_s15, 1024  ;;  %s4332_s28 = smov [#allocation12]  }
  0x85   : > { %p3986_p2 = scmp.ne.s32.totalorder %s655_s15, %s3985_s23  ;;  %s3990_s24 = sshll.u32 %s4332_s28, 4  ;;  %s3991_s24 = int_to_ptr.vmem [resolvable:$false] %s3990_s24 }
  0x86   : > { %s3992_s29 = scalar_lea.vmem %s3991_s24, 2048  ;;  %p3993_p8 = scmp.lt.s32.totalorder %s655_s15, %s3991_s24 }
  0x87   : > { %p3988_p3 = pnand %p3986_p2, %p4663_p9  ;;  %p3994_p13 = scmp.lt.s32.totalorder %s3992_s29, %s3985_s23 }
  0x89   : > { %s653_s22 = scalar_lea.hbm %s5313_s6, %s3288_s26  ;;  %p3989_p12 = pneg %p3988_p3 }
  0x8a   : > { %p3995_p4 = por %p3994_p13, %p3993_p8 }
  0x8c   : > { %p3996_p6 = pnand %p3995_p4, %p3989_p12 }
  0x8e   : > { %3999 = shalt.err (!%p3996_p6)
}
  0x8f   : > { %s5250_s19 = smov 64   ;;  %s5251_s4 = smov 4  }
  0x90   : > { %3580 = dma.hbm_to_vmem [thread:$0]  (!%p4634_p11), %s653_s22, 1024, %s655_s15, %s4647_s0, %s5250_s19, %s5250_s19, %s5251_s4  }
  0x91   : > { %s4335_s7 = smov [#allocation9]   ;;  %s3146_s1 = sshll.u32 %s4316_s21, 4 }
  0x92   : > { %s553_s20 = sshll.u32 %s4335_s7, 4  ;;  %s5314_s8 = sld [smem:[#allocation58_spill]]  ;;  %s554_s20 = int_to_ptr.vmem [resolvable:$true] %s553_s20 }
  0x93   : > { %s4011_s17 = scalar_lea.vmem %s554_s20, 16  ;;  %p5315_p10 = pneg %p4523_p7 }
  0x94   : > { %p4012_p0 = scmp.ne.s32.totalorder %s554_s20, %s4011_s17  ;;  %s4018_s5 = scalar_lea.vmem %s554_s20, 32 }
  0x95   : > { %p4019_p12 = scmp.lt.s32.totalorder %s554_s20, %s554_s20  ;;  %p4020_p8 = scmp.lt.s32.totalorder %s4018_s5, %s4011_s17 }
  0x96   : > { %p4014_p2 = pnand %p4012_p0, %p5315_p10 }
  0x97   : > { %p4021_p13 = por %p4020_p8, %p4019_p12 }
  0x98   : > { %s4688_s26 = scalar_lea.hbm %s5314_s8, %s3146_s1  ;;  %p4015_p3 = pneg %p4014_p2 }
  0x9a   : > { %p4022_p4 = pnand %p4021_p13, %p4015_p3 }
  0x9c   : > { %4025 = shalt.err (!%p4022_p4)
}
  0x9d   : > { %s5316_s3 = sld [smem:[#allocation53_spill]]  ;;  %s673_s23 = scalar_lea.vmem [#allocation13], %s4643_s14 }
  0x9e   : > { %s680_s28 = sshll.u32 %s673_s23, 4  ;;  %s5317_s9 = sld [smem:[#allocation59_spill]]  ;;  %s681_s28 = int_to_ptr.vmem [resolvable:$true] %s680_s28 }
  0x9f   : > { %s4039_s29 = scalar_lea.vmem %s681_s28, 16  ;;  %s4336_s17 = smov [#allocation13]  }
  0xa0   : > { %p4040_p6 = scmp.ne.s32.totalorder %s681_s28, %s4039_s29  ;;  %s4044_s5 = sshll.u32 %s4336_s17, 4  ;;  %s4045_s5 = int_to_ptr.vmem [resolvable:$false] %s4044_s5 }
  0xa1   : > { %s4046_s22 = scalar_lea.vmem %s4045_s5, 32  ;;  %p4047_p2 = scmp.lt.s32.totalorder %s681_s28, %s4045_s5 }
  0xa2   : > { %p4042_p0 = pnand %p4040_p6, %p4663_p9  ;;  %p4048_p3 = scmp.lt.s32.totalorder %s4046_s22, %s4039_s29 }
  0xa3   : > { %3564 = dma.hbm_to_vmem [thread:$0]  (!%p4523_p7), %s5316_s3, 16, %s554_s20, [#allocation10]  }
  0xa4   : > { %s4702_s30 = scalar_lea.hbm %s5317_s9, %s3146_s1  ;;  %p4043_p10 = pneg %p4042_p0 }
  0xa5   : > { %p4049_p12 = por %p4048_p3, %p4047_p2 }
  0xa7   : > { %p4050_p8 = pnand %p4049_p12, %p4043_p10 }
  0xa9   : > { %4053 = shalt.err (!%p4050_p8)
}
  0xaa   : > { %3583 = dma.hbm_to_vmem [thread:$0]  (!%p4634_p11), %s4688_s26, 16, %s681_s28, %s4620_s13  }
  0xab   : > { %s690_s20 = scalar_lea.vmem [#allocation14], %s4643_s14  ;;  %s4337_s15 = smov [#allocation17]  }
  0xac   : > { %s697_s1 = sshll.u32 %s690_s20, 4  ;;  %s563_s23 = sshll.u32 %s4337_s15, 4  ;;  %s698_s1 = int_to_ptr.vmem [resolvable:$true] %s697_s1  ;;  %s564_s23 = int_to_ptr.vmem [resolvable:$true] %s563_s23 }
  0xad   : > { %s4067_s24 = scalar_lea.vmem %s698_s1, 16  ;;  %s4338_s7 = smov [#allocation14]  }
  0xae   : > { %p4068_p13 = scmp.ne.s32.totalorder %s698_s1, %s4067_s24  ;;  %s4072_s29 = sshll.u32 %s4338_s7, 4  ;;  %s4073_s29 = int_to_ptr.vmem [resolvable:$false] %s4072_s29 }
  0xaf   : > { %s4074_s17 = scalar_lea.vmem %s4073_s29, 32  ;;  %p4075_p0 = scmp.lt.s32.totalorder %s698_s1, %s4073_s29 }
  0xb0   : > { %p4070_p4 = pnand %p4068_p13, %p4663_p9  ;;  %p4076_p10 = scmp.lt.s32.totalorder %s4074_s17, %s4067_s24 }
  0xb2   : > { %p4071_p6 = pneg %p4070_p4  ;;  %p4077_p2 = por %p4076_p10, %p4075_p0 }
  0xb4   : > { %p4078_p3 = pnand %p4077_p2, %p4071_p6 }
  0xb6   : > { %4081 = shalt.err (!%p4078_p3)
}
  0xb7   : > { %3586 = dma.hbm_to_vmem [thread:$0]  (!%p4634_p11), %s4702_s30, 16, %s698_s1, %s4647_s0  }
  0xb8   : > { %s3148_s26 = sshll.u32 %s4643_s14, 8  ;;  %s4093_s28 = scalar_lea.vmem %s564_s23, 2048 }
  0xb9   : > { %p4094_p12 = scmp.ne.s32.totalorder %s564_s23, %s4093_s28  ;;  %p5318_p8 = pneg %p4523_p7 }
  0xba   : > { %p4101_p5 = scmp.lt.s32.totalorder %s564_s23, %s564_s23  ;;  %p4102_p1 = scmp.lt.s32.totalorder %s4093_s28, %s4093_s28 }
  0xbb   : > { %p4096_p13 = pnand %p4094_p12, %p5318_p8 }
  0xbc   : > { %p4103_p0 = por %p4102_p1, %p4101_p5 }
  0xbd   : > { %p4097_p4 = pneg %p4096_p13 }
  0xbf   : > { %p4104_p6 = pnand %p4103_p0, %p4097_p4 }
  0xc1   : > { %4107 = shalt.err (!%p4104_p6)
}
  0xc2   : > { %s4339_s5 = smov 128   ;;  %s4340_s22 = smov 8  }
  0xc3   : > { %s5319_s16 = sld [smem:[#allocation66_spill]]  ;;  %s3289_s1 = sshll.u32 %s4316_s21, 12 }
  0xc4   : > { %s5320_s10 = sld [smem:[#allocation60_spill]]  ;;  %s708_s29 = scalar_lea.vmem [#allocation15], %s3148_s26 }
  0xc5   : > { %s715_s17 = sshll.u32 %s708_s29, 4  ;;  %s4341_s19 = smov [#allocation15]   ;;  %s716_s17 = int_to_ptr.vmem [resolvable:$true] %s715_s17 }
  0xc6   : > { %s4121_s28 = scalar_lea.vmem %s716_s17, 4096  ;;  %s4126_s27 = sshll.u32 %s4341_s19, 4  ;;  %s4127_s27 = int_to_ptr.vmem [resolvable:$false] %s4126_s27 }
  0xc7   : > { %p4122_p1 = scmp.ne.s32.totalorder %s716_s17, %s4121_s28  ;;  %s4128_s4 = scalar_lea.vmem %s4127_s27, 8192 }
  0xc8   : > { %p4129_p2 = scmp.lt.s32.totalorder %s716_s17, %s4127_s27 }
  0xc9   : > { %3567 = dma.hbm_to_vmem [thread:$0]  (!%p4523_p7), %s5319_s16, 2048, %s564_s23, [#allocation10], %s4339_s5, %s4339_s5, %s4340_s22  }
  0xca   : > { %s714_s7 = scalar_lea.hbm %s5320_s10, %s3289_s1  ;;  %p4124_p5 = pnand %p4122_p1, %p4663_p9 }
  0xcb   : > { %p4130_p7 = scmp.lt.s32.totalorder %s4128_s4, %s4121_s28 }
  0xcc   : > { %p4125_p10 = pneg %p4124_p5 }
  0xcd   : > { %p4131_p3 = por %p4130_p7, %p4129_p2 }
  0xcf   : > { %p4132_p12 = pnand %p4131_p3, %p4125_p10 }
  0xd1   : > { %4135 = shalt.err (!%p4132_p12)
}
  0xd2   : > { %s4342_s23 = smov 256   ;;  %s4343_s5 = smov 16  }
  0xd3   : > { %3589 = dma.hbm_to_vmem [thread:$0]  (!%p4634_p11), %s714_s7, 4096, %s716_s17, %s4620_s13, %s4342_s23, %s4342_s23, %s4343_s5  }
  0xd4   : > { %s5321_s12 = sld [smem:[#allocation62_spill]]  ;;  %s736_s19 = scalar_lea.vmem [#allocation16], %s3148_s26 }
  0xd5   : > { %s743_s15 = sshll.u32 %s736_s19, 4  ;;  %s4344_s24 = smov [#allocation16]   ;;  %s744_s15 = int_to_ptr.vmem [resolvable:$true] %s743_s15 }
  0xd6   : > { %s4149_s4 = scalar_lea.vmem %s744_s15, 4096  ;;  %s4154_s29 = sshll.u32 %s4344_s24, 4  ;;  %s4155_s29 = int_to_ptr.vmem [resolvable:$false] %s4154_s29 }
  0xd7   : > { %p4150_p8 = scmp.ne.s32.totalorder %s744_s15, %s4149_s4  ;;  %s4156_s28 = scalar_lea.vmem %s4155_s29, 8192 }
  0xd8   : > { %p4157_p0 = scmp.lt.s32.totalorder %s744_s15, %s4155_s29  ;;  %p4158_p6 = scmp.lt.s32.totalorder %s4156_s28, %s4149_s4 }
  0xd9   : > { %p4152_p13 = pnand %p4150_p8, %p4663_p9 }
  0xda   : > { %s742_s20 = scalar_lea.hbm %s5321_s12, %s3289_s1  ;;  %p4159_p1 = por %p4158_p6, %p4157_p0 }
  0xdb   : > { %p4153_p4 = pneg %p4152_p13 }
  0xdd   : > { %p4160_p5 = pnand %p4159_p1, %p4153_p4 }
  0xdf   : > { %4163 = shalt.err (!%p4160_p5)
}
  0xe0   : > { %s5322_s13 = smov 4   ;;  %s5323_s14 = smov 64  }
  0xe1   : > { %3592 = dma.hbm_to_vmem [thread:$0]  (!%p4634_p11), %s742_s20, 4096, %s744_s15, %s4647_s0, %s5323_s14, %s5323_s14, %s5322_s13  }
  0xe2   : > { %p5324_p10 = scmp.ne.s32.totalorder %s5288_s25, 0 }
  0xe3   : > { %s5325_s18 = sld [smem:[#allocation41_spill]] (!%p5324_p10) }
  0xe4   : > { %773 = sbr.rel (%p5324_p10) target bundleno = 4392 (0x1128), region = 92  ;;  %s5326_s26 = sld [smem:[#allocation34_spill]] (!%p5324_p10) }
  0xe5   : > { %s5327_s1 = sld [smem:[#allocation44_spill]] (!%p5324_p10) }
  0xe9   : > { %s775_s7 = sand.u32 1, %s5325_s18  }
  0xea   : > { %s4754_s17 = sand.u32 1, %s5326_s26   ;;  %s4757_s23 = scalar_lea.sflag [#allocation4], %s775_s7 }
  0xeb   : > { %s5252_s27 = sshll.u32 %s4754_s17, 3  ;;  %p5328_p9 = scmp.ne.s32.totalorder %s5327_s1, 0 }
  0xec   : > { %s4761_s11 = scalar_lea.vmem [#allocation3], %s5252_s27 }
  0xed   : > { %4235 = dma.done.wait (%p5328_p9), %s4757_s23, 128  }
  0xee   : > { %4237 = vsyncadd (%p5328_p9), %s4757_s23, 4294967168  ;;  %s785_s0 = scalar_lea.sflag [#allocation7], %s775_s7 }
  0xef   : > { %4239 = dma.done.wait (%p5328_p9), %s785_s0, 16  }
  0xf0   : > { %4241 = vsyncadd (%p5328_p9), %s785_s0, 4294967280  ;;  %p5329_p11 = scmp.eq.s32.totalorder %s5325_s18, 0 }
  0xf2   : > { %4243 = dma.done.wait (%p5329_p11), [#allocation7], 16   ;;  %p5330_p2 = pmov %p5329_p11 }
  0xf4   : > { %4245 = vsyncadd (%p5330_p2), [#allocation7], 4294967280  ;;  %p5331_p7 = pmov %p5330_p2 }
  0xf5   : > { %p5332_p3 = pmov %p5330_p2 }
  0xf6   : > { %4247 = dma.done.wait (%p5331_p7), [#allocation10], 16  }
  0xf7   : > { %4249 = vsyncadd (%p5332_p3), [#allocation10], 4294967280  ;;  %s5333_s5 = sld [smem:[#allocation31_spill]] }
  0xf8   : > { %s5334_s22 = sld [smem:[#allocation42_spill]] }
  0xfd   : > { %s4783_s30 = sand.u32 1, %s5333_s5  }
  0xfe   : > { %s3526_s20 = smul.u32 192, %s4783_s30  ;;  %p5335_p12 = scmp.ne.s32.totalorder %s5334_s22, 0 }
 0x100   : > { %s4786_s19 = scalar_lea.vmem [#allocation11], %s3526_s20 }
 0x101   : > { %4251 = dma.done.wait (%p5335_p12), %s4757_s23, 3072  }
 0x102   : > { %4253 = vsyncadd (%p5335_p12), %s4757_s23, 4294964224  ;;  %s3158_s15 = sshll.u32 %s4783_s30, 6 }
 0x103   : > { %s4795_s4 = scalar_lea.vmem [#allocation12], %s3158_s15 }
 0x104   : > { %4255 = dma.done.wait (%p5335_p12), %s785_s0, 1024  }
 0x105   : > { %4257 = vsyncadd (%p5335_p12), %s785_s0, 4294966272 }
 0x106   : > { %4259 = dma.done.wait (%p5335_p12), %s4757_s23, 16  }
 0x107   : > { %4261 = vsyncadd (%p5335_p12), %s4757_s23, 4294967280 }
 0x108   : > { %4263 = dma.done.wait (%p5335_p12), %s785_s0, 16  }
 0x109   : > { %4265 = vsyncadd (%p5335_p12), %s785_s0, 4294967280  ;;  %s3159_s28 = sshll.u32 %s4783_s30, 8 }
 0x10a   : > { %s4814_s13 = scalar_lea.vmem [#allocation15], %s3159_s28 }
 0x10b   : > { %4267 = dma.done.wait (%p5335_p12), %s4757_s23, 4096  }
 0x10c   : > { %4269 = vsyncadd (%p5335_p12), %s4757_s23, 4294963200  ;;  %s4822_s14 = scalar_lea.vmem [#allocation16], %s3159_s28 }
 0x10d   : > { %4271 = dma.done.wait (%p5335_p12), %s785_s0, 4096  }
 0x10e   : > { %4273 = vsyncadd (%p5335_p12), %s785_s0, 4294963200  ;;  %p5336_p8 = pmov %p5330_p2 }
 0x10f   : > { %p5337_p13 = pmov %p5330_p2 }
 0x110   : > { %4275 = dma.done.wait (%p5336_p8), [#allocation10], 2048  }
 0x111   : > { %4277 = vsyncadd (%p5337_p13), [#allocation10], 4294965248  ;;  %s5338_s26 = sld [smem:[#allocation36_spill]]  ;;  %s5345_s18 = sshll.u32 %s4754_s17, 3 }
 0x112   : > { %s5340_s28 = sld [smem:[#allocation63_spill]]  ;;  %s4866_s15 = scalar_lea.vmem [#allocation18], %s5345_s18 }
 0x113   : > { %s5341_s27 = sld [smem:[#allocation55_spill]] }
 0x114   : > { %s5342_s9 = sld [smem:[#allocation61_spill]] }
 0x115   : > { %s5343_s21 = sld [smem:[#allocation64_spill]] }
 0x116   : > { %s5344_s22 = sld [smem:[#allocation65_spill]] }
 0x117   : > { %p956_p4 = scmp.lt.s32.totalorder %s5338_s26, 1  ;;  %p3164_p0 = scmp.ne.s32.totalorder %s5338_s26, 0 }
 0x119   : > { %s4834_s1 = scalar_select %p956_p4, %s5338_s26, 1 }
 0x11a   : > { %980 = sbr.rel (%p3164_p0) target bundleno = 595 (0x253), region = 140 }
 0x11b   : > { %s3527_s7 = smul.u32 3, %s4834_s1  ;;  %s3163_s20 = sshll.u32 %s4834_s1, 2 }
 0x11c   : > { %s969_s29 = scalar_lea.vmem %s5340_s28, %s4834_s1  ;;  %s4854_s10 = scalar_lea.vmem %s5342_s9, %s3163_s20 }
 0x11d   : > { %s4849_s3 = scalar_lea.vmem %s5341_s27, %s3527_s7  ;;  %s972_s23 = scalar_lea.vmem %s5343_s21, %s4834_s1 }
 0x11e   : > { %s975_s2 = scalar_lea.vmem %s5344_s22, %s4834_s1 }
 0x11f   : > { %v981_v0 = vld [vmem:[%s4761_s11] sm:$0xff]  ;;  %v3165_v9 = vld [vmem:[#allocation8] ss:$0 sm:$0xff]  ;;  %v3166_v11 = vld [vmem:[#allocation9] ss:$0 sm:$0xff] }
 0x120   : > { %984 = vadd.xlane.f32.xlu0 %v981_v0 }
 0x1a9   : > { %v985_v1 = vpop.xlane.xlu0 %984 }
 0x1aa   : > { %v987_v2 = vmul.f32 0.0078125, %v985_v1 }
 0x1ac   : > { %v988_v3 = vsub.f32 %v981_v0, %v987_v2 }
 0x1ae   : > { %v989_v4 = vmul.f32 %v988_v3, %v988_v3 }
 0x1b0   : > { %990 = vadd.xlane.f32.xlu0 %v989_v4 }
 0x239   : > { %v991_v5 = vpop.xlane.xlu0 %990 }
 0x23a   : > { %v992_v6 = vmul.f32 0.0078125, %v991_v5 }
 0x23c   : > { %v993_v7 = vadd.f32 1e-12, %v992_v6 }
 0x23e   : > { %3712 = vrsqrt.f32 %v993_v7 }
 0x24b   : > { %v3713_v8 = vpop.eup %3712 }
 0x24c   : > { %v995_v10 = vmul.f32 %v3713_v8, %v988_v3 }
 0x24e   : > { %v1002_v12 = vmul.f32 %v3165_v9, %v995_v10 }
 0x250   : > { %v1009_v13 = vadd.f32 %v3166_v11, %v1002_v12 }
 0x252   : > { %1010 = vst [vmem:[#allocation2] sm:$0xff] %v1009_v13 }
 0x253 PF: > { %v3714_v14 = vld [vmem:[%s4786_s19 + $0xac] ss:$12 sps:$4 sm:$0xff]   ;;  %v3716_v15 = vld [vmem:[%s4786_s19 + $0xa8] ss:$12 sps:$4 sm:$0xff]   ;;  %v4345_v16 = vmov 0   ;;  %v4346_v33 = vmov 0.0   ;;  %v1047_v34 = vlaneseq }
 0x254   : > { %1222 = vmatprep.mubr.bf16.mxu0 %v4345_v16  ;;  %1190 = vmatprep.subr.bf16.mxu0 %v3714_v14  ;;  %v3717_v17 = vld [vmem:[%s4786_s19 + $0x94] ss:$12 sps:$4 sm:$0xff]   ;;  %v3719_v18 = vld [vmem:[%s4786_s19 + $0x90] ss:$12 sps:$4 sm:$0xff]   ;;  %v3722_v20 = vld [vmem:[%s4786_s19 + $0x78] ss:$12 sps:$4 sm:$0xff]  }
 0x255   : > { %1191 = vmatpush1.bf16.msra.mxu0 %v3716_v15  ;;  %v3720_v19 = vld [vmem:[%s4786_s19 + $0x7c] ss:$12 sps:$4 sm:$0xff]   ;;  %v3723_v21 = vld [vmem:[%s4786_s19 + $0x64] ss:$12 sps:$4 sm:$0xff]   ;;  %v3725_v22 = vld [vmem:[%s4786_s19 + $0x60] ss:$12 sps:$4 sm:$0xff]   ;;  %3389 = vmatprep.subr.bf16.mxu1 %v4346_v33 }
 0x256   : > { %1192 = vmatprep.subr.bf16.mxu0 %v3717_v17  ;;  %v3726_v23 = vld [vmem:[%s4786_s19 + $0x4c] ss:$12 sps:$4 sm:$0xff]   ;;  %v3728_v24 = vld [vmem:[%s4786_s19 + $0x48] ss:$12 sps:$4 sm:$0xff]   ;;  %v3731_v26 = vld [vmem:[%s4786_s19 + $0x30] ss:$12 sps:$4 sm:$0xff]  }
 0x257   : > { %v3729_v25 = vld [vmem:[%s4786_s19 + $0x34] ss:$12 sps:$4 sm:$0xff]   ;;  %v3732_v27 = vld [vmem:[%s4786_s19 + $0x1c] ss:$12 sps:$4 sm:$0xff]   ;;  %v3734_v28 = vld [vmem:[%s4786_s19 + $0x18] ss:$12 sps:$4 sm:$0xff]  }
 0x258   : > { %v3735_v29 = vld [vmem:[%s4786_s19 + $0x4] ss:$12 sps:$4 sm:$0xff]   ;;  %v3737_v30 = vld [vmem:[%s4786_s19] ss:$12 sps:$4 sm:$0xff]   ;;  %vm4347_vm0 = vmmov 0   ;;  %v4897_v35 = vshrl.u32 %v1047_v34, 7 }
 0x259   : > { %1193 = vmatpush1.bf16.msra.mxu0 %v3719_v18  ;;  %v4887_v31 = vld [vmem:[#allocation2] sm:$0xff]  ;;  %3405 = vmatprep.mubr.msk.bf16.mxu1 %vm4347_vm0, %v4346_v33  ;;  %vm1291_vm1 = vcmask 261120   ;;  %v3738_v50 = vld [vmem:[%s4786_s19 + $0xb0] ss:$12 sps:$4 sm:$0xff]   ;;  %s5346_s6 = scalar_lea.vmem [#allocation6], %s4754_s17  ;;  %vm1346_vm2 = vcmask 64512  }
 0x25a   : > { %1194 = vmatprep.subr.bf16.mxu0 %v3720_v19  ;;  %v1012_v32 = vpack.c.bf16 %v4887_v31, %v4887_v31  ;;  %v1053_v36 = vsub.s32 1, %v4897_v35  ;;  %v1049_v37 = vsub.s32 0, %v4897_v35  ;;  %v4902_v38 = vld [vmem:[%s4849_s3] sm:$0x7]  ;;  %s4348_s3 = smov 96   ;;  %3390 = vmatpush3.bf16.msra.mxu1 %v3738_v50  ;;  %vm1362_vm3 = vcmask 1043456  }
 0x25b   : > { %v3739_v51 = vld [vmem:[%s4786_s19 + $0x98] ss:$12 sps:$4 sm:$0xff]   ;;  %3391 = vmatprep.subr.bf16.mxu1 %v4346_v33  ;;  %v3740_v52 = vld [vmem:[%s4786_s19 + $0x80] ss:$12 sps:$4 sm:$0xff]   ;;  %v3741_v53 = vld [vmem:[%s4786_s19 + $0x68] ss:$12 sps:$4 sm:$0xff]  }
 0x25c   : > { %v1054_v39 = vrot.slane %v4902_v38, %v1053_v36  ;;  %v1050_v41 = vrot.slane %v4902_v38, %v1049_v37  ;;  %v3742_v54 = vld [vmem:[%s4786_s19 + $0x50] ss:$12 sps:$4 sm:$0xff]   ;;  %v3743_v55 = vld [vmem:[%s4786_s19 + $0x38] ss:$12 sps:$4 sm:$0xff]   ;;  %v3744_v56 = vld [vmem:[%s4786_s19 + $0x20] ss:$12 sps:$4 sm:$0xff]  }
 0x25d   : > { %1195 = vmatpush1.bf16.msra.mxu0 %v3722_v20  ;;  %v3745_v57 = vld [vmem:[%s4786_s19 + $0x8] ss:$12 sps:$4 sm:$0xff]   ;;  %v4950_v62 = vld [vmem:[%s5346_s6] ss:$0 sm:$0xff]  ;;  %s4349_s8 = smov 64   ;;  %s4350_s9 = smov 32  }
 0x25e   : > { %1196 = vmatprep.subr.bf16.mxu0 %v3723_v21  ;;  %3392 = vmatpush3.bf16.msra.mxu1 %v3739_v51  ;;  %v3746_v50 = vld [vmem:[%s4795_s4 + $0x8] sm:$0xff]   ;;  %s5347_s21 = sld [smem:[#allocation57_spill]]  ;;  %s5349_s11 = scalar_lea.vmem [#allocation13], %s4783_s30 }
 0x25f   : > { %3393 = vmatprep.subr.bf16.mxu1 %v4346_v33  ;;  %s5350_s25 = scalar_lea.vmem [#allocation14], %s4783_s30  ;;  %s5354_s7 = sld [smem:[#allocation36_spill]] }
 0x261   : > { %1197 = vmatpush1.bf16.msra.mxu0 %v3725_v22  ;;  %v1057_v22 = vsub.s32 2, %v4897_v35 }
 0x262   : > { %1198 = vmatprep.subr.bf16.mxu0 %v3726_v23  ;;  %3394 = vmatpush3.bf16.msra.mxu1 %v3740_v52  ;;  %v3747_v52 = vld [vmem:[%s4795_s4] sm:$0xff]  }
 0x263   : > { %3395 = vmatprep.subr.bf16.mxu1 %v4346_v33  ;;  %v1058_v23 = vrot.slane %v4902_v38, %v1057_v22 }
 0x264   : > { %s5348_s27 = scalar_lea.vmem %s5347_s21, %s4834_s1 }
 0x265   : > { %1199 = vmatpush1.bf16.msra.mxu0 %v3728_v24  ;;  %p3282_p6 = scmp.ne.s32.totalorder %s5354_s7, 1 }
 0x266   : > { %1200 = vmatprep.subr.bf16.mxu0 %v3729_v25  ;;  %3396 = vmatpush3.bf16.msra.mxu1 %v3741_v53  ;;  %s5355_s22 = sld [smem:[#allocation67_spill]] (!%p3282_p6) }
 0x267   : > { %3397 = vmatprep.subr.bf16.mxu1 %v4346_v33 }
 0x269   : > { %1201 = vmatpush1.bf16.msra.mxu0 %v3731_v26 }
 0x26a   : > { %1202 = vmatprep.subr.bf16.mxu0 %v3732_v27  ;;  %3398 = vmatpush3.bf16.msra.mxu1 %v3742_v54 }
 0x26b   : > { %3399 = vmatprep.subr.bf16.mxu1 %v4346_v33 }
 0x26d   : > { %1203 = vmatpush1.bf16.msra.mxu0 %v3734_v28 }
 0x26e   : > { %1204 = vmatprep.subr.bf16.mxu0 %v3735_v29  ;;  %3400 = vmatpush3.bf16.msra.mxu1 %v3743_v55 }
 0x26f   : > { %3401 = vmatprep.subr.bf16.mxu1 %v4346_v33 }
 0x271   : > { %1205 = vmatpush1.bf16.msra.mxu0 %v3737_v30 }
 0x272   : > { %3409 = vmatprep.subr.bf16.mxu0 %v4346_v33  ;;  %3402 = vmatpush3.bf16.msra.mxu1 %v3744_v56 }
 0x273   : > { %3403 = vmatprep.subr.bf16.mxu1 %v4346_v33 }
 0x274   : > { %1223 = vmatmul.mubr.bf16.vlgmr.msra.gmra.mxu0 %v1012_v32 }
 0x275   : > { %3411 = vmatprep.mubr.msk.bf16.mxu0 %vm4347_vm0, %v4346_v33 }
 0x276   : > { %3404 = vmatpush3.bf16.msra.mxu1 %v3745_v57 }
 0x277   : > { %3415 = vmatprep.subr.bf16.mxu1 %v4346_v33 }
 0x279   : > { %3406 = vmatmul.mubr.bf16.vlgmr.msra.gmra.mxu1 %v1012_v32 }
 0x27a   : > { %3417 = vmatprep.mubr.msk.bf16.mxu1 %vm4347_vm0, %v4346_v33 }
 0x334   : > { %v1224_v40 = vpop.f32.mrf.mxu0 }
 0x335   : > { %v1225_v45 = vadd.f32 %v1224_v40, %v1050_v41  ;;  %v3748_v41 = vld [vmem:[%s4795_s4 + $0x18] sm:$0xff]  }
 0x336   : > { %v1226_v42 = vpop.f32.mrf.mxu0 }
 0x337   : > { %v1227_v43 = vadd.f32 %v1226_v42, %v1054_v39  ;;  %v4916_v49 = vpack.c.bf16 %v1225_v45, %v1225_v45  ;;  %v3749_v42 = vld [vmem:[%s4795_s4 + $0x10] sm:$0xff]  }
 0x338   : > { %v1228_v44 = vpop.f32.mrf.mxu0 }
 0x339   : > { %v4910_v46 = vpack.c.bf16 %v1227_v43, %v1227_v43  ;;  %v1265_v15 = vpop.f32.mrf.mxu1 }
 0x33a   : > { %v1229_v47 = vpop.f32.mrf.mxu0  ;;  %v1266_v24 = vadd.f32 %v1265_v15, %v1058_v23 }
 0x33b   : > { %1411 = vrot.lane.b32.xlu0 %v4910_v46, %s4348_s3  ;;  %v1296_v48 = vsel %vm1291_vm1, %v4910_v46, 0  ;;  %v3407_v17 = vpop.f32.mrf.mxu1 }
 0x33c   : > { %3410 = vmatpush3.bf16.xpose.msra.mxu0 %v1296_v48  ;;  %v4961_v25 = vpack.c.bf16 %v1266_v24, %v1266_v24 }
 0x33d   : > { %3421 = vmatprep.subr.bf16.mxu0 %v4346_v33  ;;  %v1268_v18 = vpop.f32.mrf.mxu1 }
 0x33e   : > { %v1364_v26 = vsel %vm1362_vm3, %v4961_v25, 0 }
 0x33f   : > { %1408 = vrot.lane.b32.xlu0 %v4916_v49, %s4348_s3  ;;  %v3408_v19 = vpop.f32.mrf.mxu1  ;;  %3416 = vmatpush3.bf16.msra.mxu1 %v1364_v26 }
 0x340   : > { %3427 = vmatprep.subr.bf16.mxu1 %v4346_v33 }
 0x343   : > { %3412 = vmatmul.mubr.msk.bf16.vlgmr.msra.gmra.mxu0 %vm1291_vm1, %v4916_v49 }
 0x344   : > { %3423 = vmatprep.mubr.msk.bf16.mxu0 %vm4347_vm0, %v4346_v33 }
 0x3ad   : > { %v1412_v58 = vpop.permute.xlu0 %1411 }
 0x3ae   : > { %v1417_v59 = vsel %vm1291_vm1, %v1412_v58, 0 }
 0x3af   : > { %3422 = vmatpush3.bf16.xpose.msra.mxu0 %v1417_v59 }
 0x3b0   : > { %3433 = vmatprep.subr.bf16.mxu0 %v4346_v33 }
 0x3b1   : > { %v1409_v60 = vpop.permute.xlu0 %1408 }
 0x3b6   : > { %3424 = vmatmul.mubr.msk.bf16.vlgmr.msra.gmra.mxu0 %vm1291_vm1, %v1409_v60 }
 0x3b7   : > { %3437 = vmatprep.mubr.msk.bf16.mxu0 %vm4347_vm0, %v4346_v33  ;;  %3434 = vmatpush3.bf16.msra.mxu0 %v3748_v41 }
 0x3b8   : > { %3435 = vmatprep.subr.bf16.mxu0 %v4346_v33 }
 0x3bb   : > { %3436 = vmatpush3.bf16.msra.mxu0 %v3749_v42 }
 0x3bc   : > { %3449 = vmatprep.subr.bf16.mxu0 %v4346_v33 }
 0x403   : > { %v1332_v61 = vpop.f32.mrf.mxu0 }
 0x404   : > { %v1338_v63 = vmul.f32 0.17677669, %v1332_v61 }
 0x405   : > { %v3413_v0 = vpop.f32.mrf.mxu0 }
 0x406   : > { %v1345_v1 = vadd.f32 %v4950_v62, %v1338_v63 }
 0x407   : > { %v1335_v2 = vpop.f32.mrf.mxu0 }
 0x408   : > { %v1347_v3 = vsel %vm1346_vm2, %v1345_v1, -inf }
 0x409   : > { %1348 = vmax.xlane.f32.xlu1 %v1347_v3  ;;  %v3414_v4 = vpop.f32.mrf.mxu0 }
 0x476   : > { %v1453_v5 = vpop.f32.mrf.mxu0 }
 0x477   : > { %v1459_v6 = vmul.f32 0.17677669, %v1453_v5 }
 0x478   : > { %v3425_v7 = vpop.f32.mrf.mxu0 }
 0x479   : > { %v1460_v8 = vadd.f32 %v4950_v62, %v1459_v6 }
 0x47a   : > { %v1456_v9 = vpop.f32.mrf.mxu0 }
 0x47b   : > { %v1461_v10 = vsel %vm1346_vm2, %v1460_v8, -inf }
 0x47c   : > { %1462 = vmax.xlane.f32.xlu1 %v1461_v10  ;;  %v3426_v11 = vpop.f32.mrf.mxu0 }
 0x492   : > { %v1349_v12 = vpop.xlane.xlu1 %1348 }
 0x493   : > { %v1350_v13 = vsub.f32 %v1345_v1, %v1349_v12 }
 0x495   : > { %v1351_v14 = vmul.f32 1.442695, %v1350_v13 }
 0x497   : > { %3834 = vpow2.f32 %v1351_v14 }
 0x4a4   : > { %v3835_v20 = vpop.eup %3834 }
 0x4a5   : > { %v1353_v21 = vsel %vm1346_vm2, %v3835_v20, 0.0 }
 0x4a6   : > { %1354 = vadd.xlane.f32.xlu0 %v1353_v21 }
 0x4bc   : > { %1697 = vrot.lane.b32.xlu0 %v4961_v25, %s4349_s8 }
 0x505   : > { %v1463_v27 = vpop.xlane.xlu1 %1462 }
 0x506   : > { %v1464_v28 = vsub.f32 %v1460_v8, %v1463_v27 }
 0x508   : > { %v1465_v29 = vmul.f32 1.442695, %v1464_v28  ;;  %v3750_v28 = vld [vmem:[%s4795_s4 + $0x28] sm:$0xff]  }
 0x50a   : > { %3836 = vpow2.f32 %v1465_v29 }
 0x517   : > { %v3837_v30 = vpop.eup %3836 }
 0x518   : > { %v1467_v32 = vsel %vm1346_vm2, %v3837_v30, 0.0 }
 0x519   : > { %1468 = vadd.xlane.f32.xlu1 %v1467_v32 }
 0x52a   : > { %1474 = vrot.lane.b32.xlu1 %v4961_v25, %s4348_s3 }
 0x52e   : > { %1635 = vrot.lane.b32.xlu1 %v4910_v46, %s4349_s8 }
 0x52f   : > { %v1355_v34 = vpop.xlane.xlu0 %1354 }
 0x530   : > { %3838 = vrcp.f32 %v1355_v34 }
 0x532   : > { %1633 = vrot.lane.b32.xlu1 %v4916_v49, %s4349_s8 }
 0x533   : > { %v1698_v53 = vpop.permute.xlu0 %1697 }
 0x534   : > { %v1703_v57 = vsel %vm1362_vm3, %v1698_v53, 0 }
 0x53d   : > { %v3839_v38 = vpop.eup %3838 }
 0x53e   : > { %v1357_v39 = vmul.f32 %v3839_v38, %v3835_v20 }
 0x540   : > { %v1358_v40 = vpack.c.bf16 %v1357_v39, %v1357_v39 }
 0x542   : > { %3418 = vmatmul.mubr.msk.bf16.vlgmr.msra.gmra.mxu1 %vm1346_vm2, %v1358_v40 }
 0x543   : > { %3429 = vmatprep.mubr.msk.bf16.mxu1 %vm4347_vm0, %v4346_v33 }
 0x5a2   : > { %v1469_v43 = vpop.xlane.xlu1 %1468 }
 0x5a3   : > { %3840 = vrcp.f32 %v1469_v43 }
 0x5a6   : > { %v1475_v44 = vpop.permute.xlu1 %1474 }
 0x5a7   : > { %v1480_v45 = vsel %vm1362_vm3, %v1475_v44, 0 }
 0x5a8   : > { %3428 = vmatpush3.bf16.msra.mxu1 %v1480_v45 }
 0x5a9   : > { %3441 = vmatprep.subr.bf16.mxu1 %v4346_v33 }
 0x5aa   : > { %v1636_v60 = vpop.permute.xlu1 %1635 }
 0x5ab   : > { %v1641_v1 = vsel %vm1291_vm1, %v1636_v60, 0 }
 0x5ae   : > { %v1634_v4 = vpop.permute.xlu1 %1633 }
 0x5b0   : > { %v3841_v47 = vpop.eup %3840 }
 0x5b1   : > { %v1471_v48 = vmul.f32 %v3841_v47, %v3837_v30 }
 0x5b3   : > { %v1472_v51 = vpack.c.bf16 %v1471_v48, %v1471_v48 }
 0x5b5   : > { %3430 = vmatmul.mubr.msk.bf16.vlgmr.msra.gmra.mxu1 %vm1346_vm2, %v1472_v51 }
 0x5b6   : > { %3442 = vmatpush3.bf16.msra.mxu1 %v3746_v50  ;;  %3445 = vmatprep.mubr.msk.bf16.mxu1 %vm4347_vm0, %v4346_v33 }
 0x5b7   : > { %3443 = vmatprep.subr.bf16.mxu1 %v4346_v33 }
 0x5ba   : > { %3444 = vmatpush3.bf16.msra.mxu1 %v3747_v52 }
 0x5bb   : > { %3455 = vmatprep.subr.bf16.mxu1 %v4346_v33 }
 0x602   : > { %v1400_v54 = vpop.f32.mrf.mxu1 }
 0x603   : > { %v1406_v55 = vpack.c.bf16 %v1400_v54, %v1400_v54 }
 0x604   : > { %v3419_v56 = vpop.f32.mrf.mxu1 }
 0x605   : > { %3446 = vmatmul.mubr.msk.bf16.vlgmr.msra.gmra.mxu1 %vm1291_vm1, %v1406_v55 }
 0x606   : > { %3456 = vmatpush3.bf16.msra.mxu1 %v1703_v57  ;;  %v1403_v58 = vpop.f32.mrf.mxu1  ;;  %3457 = vmatprep.mubr.msk.bf16.mxu1 %vm4347_vm0, %v4346_v33 }
 0x607   : > { %3469 = vmatprep.subr.bf16.mxu1 %v4346_v33 }
 0x608   : > { %v3420_v59 = vpop.f32.mrf.mxu1 }
 0x675   : > { %v1516_v61 = vpop.f32.mrf.mxu1 }
 0x676   : > { %v1522_v63 = vpack.c.bf16 %v1516_v61, %v1516_v61 }
 0x677   : > { %v3431_v0 = vpop.f32.mrf.mxu1 }
 0x678   : > { %3438 = vmatmul.mubr.msk.bf16.vlgmr.msra.gmra.mxu0 %vm1291_vm1, %v1522_v63  ;;  %v3752_v0 = vld [vmem:[%s4795_s4 + $0x38] sm:$0xff]  }
 0x679   : > { %3450 = vmatpush3.bf16.xpose.msra.mxu0 %v1641_v1  ;;  %v1519_v2 = vpop.f32.mrf.mxu1  ;;  %3451 = vmatprep.mubr.msk.bf16.mxu0 %vm4347_vm0, %v4346_v33 }
 0x67a   : > { %3461 = vmatprep.subr.bf16.mxu0 %v4346_v33 }
 0x67b   : > { %v3432_v3 = vpop.f32.mrf.mxu1 }
 0x680   : > { %3452 = vmatmul.mubr.msk.bf16.vlgmr.msra.gmra.mxu0 %vm1291_vm1, %v1634_v4 }
 0x681   : > { %3465 = vmatprep.mubr.msk.bf16.mxu0 %vm4347_vm0, %v4346_v33  ;;  %3462 = vmatpush3.bf16.msra.mxu0 %v3750_v28  ;;  %v3760_v28 = vld [vmem:[%s4814_s13 + $0xc0] ss:$16 sps:$4 sm:$0xff]  }
 0x682   : > { %3463 = vmatprep.subr.bf16.mxu0 %v4346_v33 }
 0x6c5   : > { %v5001_v5 = vpop.f32.mrf.mxu1 }
 0x6c7   : > { %v3447_v6 = vpop.f32.mrf.mxu1 }
 0x6c9   : > { %v1630_v7 = vpop.f32.mrf.mxu1 }
 0x6ca   : > { %v3753_v7 = vld [vmem:[%s4795_s4 + $0x30] sm:$0xff]  }
 0x6cb   : > { %v3448_v8 = vpop.f32.mrf.mxu1 }
 0x738   : > { %v5003_v9 = vpop.f32.mrf.mxu0 }
 0x73a   : > { %v3439_v10 = vpop.f32.mrf.mxu0 }
 0x73c   : > { %v1575_v11 = vpop.f32.mrf.mxu0 }
 0x73e   : > { %v3440_v12 = vpop.f32.mrf.mxu0 }
 0x740   : > { %v1677_v13 = vpop.f32.mrf.mxu0 }
 0x741   : > { %v1683_v14 = vmul.f32 0.17677669, %v1677_v13  ;;  %v3212_v13 = vld [vmem:[%s5348_s27] ss:$0 sm:$0xff] }
 0x742   : > { %v3453_v15 = vpop.f32.mrf.mxu0 }
 0x743   : > { %v1684_v17 = vadd.f32 %v4950_v62, %v1683_v14 }
 0x744   : > { %v1680_v18 = vpop.f32.mrf.mxu0 }
 0x745   : > { %v1685_v19 = vsel %vm1346_vm2, %v1684_v17, -inf }
 0x746   : > { %1686 = vmax.xlane.f32.xlu1 %v1685_v19  ;;  %v3454_v20 = vpop.f32.mrf.mxu0 }
 0x7cf   : > { %v1687_v21 = vpop.xlane.xlu1 %1686 }
 0x7d0   : > { %v1688_v23 = vsub.f32 %v1684_v17, %v1687_v21  ;;  %v3754_v21 = vld [vmem:[%s4814_s13 + $0xe0] ss:$16 sps:$4 sm:$0xff]  }
 0x7d2   : > { %v1689_v24 = vmul.f32 1.442695, %v1688_v23  ;;  %v3757_v23 = vld [vmem:[%s4814_s13 + $0xe8] ss:$16 sps:$4 sm:$0xff]  }
 0x7d4   : > { %3842 = vpow2.f32 %v1689_v24  ;;  %v3759_v24 = vld [vmem:[%s4814_s13 + $0xec] ss:$16 sps:$4 sm:$0xff]  }
 0x7e1   : > { %v3843_v26 = vpop.eup %3842 }
 0x7e2   : > { %v1691_v27 = vsel %vm1346_vm2, %v3843_v26, 0.0 }
 0x7e3   : > { %1692 = vadd.xlane.f32.xlu0 %v1691_v27  ;;  %v3765_v27 = vld [vmem:[%s4814_s13 + $0xcc] ss:$16 sps:$4 sm:$0xff]  }
 0x7f9   : > { %1804 = vrot.lane.b32.xlu0 %v4910_v46, %s4350_s9 }
 0x7fd   : > { %1802 = vrot.lane.b32.xlu0 %v4916_v49, %s4350_s9  ;;  %v3751_v49 = vld [vmem:[%s4795_s4 + $0x20] sm:$0xff]  }
 0x7fe   : > { %3464 = vmatpush3.bf16.msra.mxu0 %v3751_v49  ;;  %v3769_v49 = vld [vmem:[%s4814_s13 + $0xa8] ss:$16 sps:$4 sm:$0xff]  }
 0x7ff   : > { %3475 = vmatprep.subr.bf16.mxu0 %v4346_v33 }
 0x86c   : > { %v1693_v29 = vpop.xlane.xlu0 %1692 }
 0x86d   : > { %3844 = vrcp.f32 %v1693_v29  ;;  %v3763_v29 = vld [vmem:[%s4814_s13 + $0xc8] ss:$16 sps:$4 sm:$0xff]  }
 0x870   : > { %v1805_v34 = vpop.permute.xlu0 %1804 }
 0x871   : > { %v1810_v39 = vsel %vm1291_vm1, %v1805_v34, 0 }
 0x874   : > { %v1803_v46 = vpop.permute.xlu0 %1802 }
 0x87a   : > { %v3845_v30 = vpop.eup %3844 }
 0x87b   : > { %v1695_v32 = vmul.f32 %v3845_v30, %v3843_v26  ;;  %v3762_v26 = vld [vmem:[%s4814_s13 + $0xc4] ss:$16 sps:$4 sm:$0xff]  }
 0x87d   : > { %v1696_v38 = vpack.c.bf16 %v1695_v32, %v1695_v32 }
 0x87f   : > { %3458 = vmatmul.mubr.msk.bf16.vlgmr.msra.gmra.mxu1 %vm1346_vm2, %v1696_v38  ;;  %v3768_v38 = vld [vmem:[%s4814_s13 + $0xa4] ss:$16 sps:$4 sm:$0xff]  }
 0x880   : > { %3470 = vmatpush3.bf16.xpose.msra.mxu1 %v1810_v39  ;;  %3471 = vmatprep.mubr.msk.bf16.mxu1 %vm4347_vm0, %v4346_v33  ;;  %v3771_v39 = vld [vmem:[%s4814_s13 + $0xac] ss:$16 sps:$4 sm:$0xff]  }
 0x881   : > { %3481 = vmatprep.subr.bf16.mxu1 %v4346_v33 }
 0x887   : > { %3472 = vmatmul.mubr.msk.bf16.vlgmr.msra.gmra.mxu1 %vm1291_vm1, %v1803_v46  ;;  %v3766_v46 = vld [vmem:[%s4814_s13 + $0xa0] ss:$16 sps:$4 sm:$0xff]  }
 0x888   : > { %3485 = vmatprep.mubr.msk.bf16.mxu1 %vm4347_vm0, %v4346_v33  ;;  %3482 = vmatpush3.bf16.msra.mxu1 %v3752_v0 }
 0x889   : > { %3483 = vmatprep.subr.bf16.mxu1 %v4346_v33 }
 0x88c   : > { %3484 = vmatpush3.bf16.msra.mxu1 %v3753_v7  ;;  %v3802_v7 = vld [vmem:[%s4822_s14 + $0x78] sm:$0xff]  }
 0x88d   : > { %2264 = vmatprep.subr.bf16.mxu1 %v3759_v24  ;;  %v3819_v24 = vld [vmem:[%s4822_s14 + $0xd8] sm:$0xff]  }
 0x93f   : > { %v1739_v40 = vpop.f32.mrf.mxu1 }
 0x940   : > { %v1745_v41 = vpack.c.bf16 %v1739_v40, %v1739_v40  ;;  %v3772_v40 = vld [vmem:[%s4814_s13 + $0x80] ss:$16 sps:$4 sm:$0xff]  }
 0x941   : > { %v3459_v42 = vpop.f32.mrf.mxu1 }
 0x942   : > { %3466 = vmatmul.mubr.msk.bf16.vlgmr.msra.gmra.mxu0 %vm1291_vm1, %v1745_v41  ;;  %v3774_v41 = vld [vmem:[%s4814_s13 + $0x84] ss:$16 sps:$4 sm:$0xff]   ;;  %v3775_v42 = vld [vmem:[%s4814_s13 + $0x88] ss:$16 sps:$4 sm:$0xff]  }
 0x943   : > { %v1742_v43 = vpop.f32.mrf.mxu1  ;;  %3477 = vmatprep.mubr.msk.bf16.mxu0 %vm4347_vm0, %v4346_v33 }
 0x944   : > { %v3777_v43 = vld [vmem:[%s4814_s13 + $0x8c] ss:$16 sps:$4 sm:$0xff]  }
 0x945   : > { %v3460_v44 = vpop.f32.mrf.mxu1 }
 0x946   : > { %v3780_v44 = vld [vmem:[%s4814_s13 + $0x64] ss:$16 sps:$4 sm:$0xff]  }
 0x947   : > { %v1846_v45 = vpop.f32.mrf.mxu1 }
 0x948   : > { %v1852_v47 = vmul.f32 0.17677669, %v1846_v45  ;;  %v3783_v45 = vld [vmem:[%s4814_s13 + $0x6c] ss:$16 sps:$4 sm:$0xff]  }
 0x949   : > { %v3473_v48 = vpop.f32.mrf.mxu1 }
 0x94a   : > { %v1853_v50 = vadd.f32 %v4950_v62, %v1852_v47  ;;  %v1628_v62 = vadd.f32 %v5001_v5, %v5003_v9  ;;  %v3778_v47 = vld [vmem:[%s4814_s13 + $0x60] ss:$16 sps:$4 sm:$0xff]   ;;  %v3781_v48 = vld [vmem:[%s4814_s13 + $0x68] ss:$16 sps:$4 sm:$0xff]  }
 0x94b   : > { %v1849_v51 = vpop.f32.mrf.mxu1 }
 0x94c   : > { %v1854_v52 = vsel %vm1346_vm2, %v1853_v50, -inf  ;;  %v3789_v51 = vld [vmem:[%s4814_s13 + $0x4c] ss:$16 sps:$4 sm:$0xff]  }
 0x94d   : > { %1855 = vmax.xlane.f32.xlu0 %v1854_v52  ;;  %v3474_v53 = vpop.f32.mrf.mxu1  ;;  %v3784_v52 = vld [vmem:[%s4814_s13 + $0x40] ss:$16 sps:$4 sm:$0xff]  }
 0x94e   : > { %v3787_v53 = vld [vmem:[%s4814_s13 + $0x48] ss:$16 sps:$4 sm:$0xff]  }
 0x9d6   : > { %v1856_v54 = vpop.xlane.xlu0 %1855 }
 0x9d7   : > { %v1857_v55 = vsub.f32 %v1853_v50, %v1856_v54  ;;  %v3786_v50 = vld [vmem:[%s4814_s13 + $0x44] ss:$16 sps:$4 sm:$0xff]  }
 0x9d8   : > { %v3792_v54 = vld [vmem:[%s4814_s13 + $0x24] ss:$16 sps:$4 sm:$0xff]  }
 0x9d9   : > { %v1858_v56 = vmul.f32 1.442695, %v1857_v55  ;;  %v3795_v55 = vld [vmem:[%s4814_s13 + $0x2c] ss:$16 sps:$4 sm:$0xff]  }
 0x9db   : > { %3846 = vpow2.f32 %v1858_v56  ;;  %v3790_v56 = vld [vmem:[%s4814_s13 + $0x20] ss:$16 sps:$4 sm:$0xff]  }
 0x9e8   : > { %v3847_v57 = vpop.eup %3846 }
 0x9e9   : > { %v1860_v58 = vsel %vm1346_vm2, %v3847_v57, 0.0 }
 0x9ea   : > { %1861 = vadd.xlane.f32.xlu1 %v1860_v58  ;;  %v3798_v58 = vld [vmem:[%s4814_s13 + $0x4] ss:$16 sps:$4 sm:$0xff]  }
 0x9fb   : > { %1866 = vrot.lane.b32.xlu1 %v4961_v25, %s4350_s9 }
 0xa02   : > { %v1795_v59 = vpop.f32.mrf.mxu0 }
 0xa03   : > { %v1801_v60 = vadd.f32 %v1795_v59, %v1628_v62  ;;  %v3801_v62 = vld [vmem:[%s4814_s13 + $0xc] ss:$16 sps:$4 sm:$0xff]   ;;  %v3796_v59 = vld [vmem:[%s4814_s13] ss:$16 sps:$4 sm:$0xff]  }
 0xa04   : > { %v3467_v61 = vpop.f32.mrf.mxu0 }
 0xa06   : > { %v1798_v63 = vpop.f32.mrf.mxu0 }
 0xa08   : > { %v3468_v1 = vpop.f32.mrf.mxu0 }
 0xa73   : > { %v1862_v2 = vpop.xlane.xlu1 %1861 }
 0xa74   : > { %3848 = vrcp.f32 %v1862_v2  ;;  %v3213_v2 = vld [vmem:[%s5349_s11] ss:$0 sm:$0xff] }
 0xa77   : > { %v1867_v3 = vpop.permute.xlu1 %1866 }
 0xa78   : > { %v1872_v4 = vsel %vm1362_vm3, %v1867_v3, 0 }
 0xa79   : > { %3476 = vmatpush3.bf16.msra.mxu0 %v1872_v4  ;;  %v3214_v4 = vld [vmem:[%s5350_s25] ss:$0 sm:$0xff] }
 0xa81   : > { %v3849_v25 = vpop.eup %3848 }
 0xa82   : > { %v1864_v6 = vmul.f32 %v3849_v25, %v3847_v57  ;;  %v3793_v57 = vld [vmem:[%s4814_s13 + $0x28] ss:$16 sps:$4 sm:$0xff]  }
 0xa84   : > { %v1865_v5 = vpack.c.bf16 %v1864_v6, %v1864_v6 }
 0xa86   : > { %3478 = vmatmul.mubr.msk.bf16.vlgmr.msra.gmra.mxu0 %vm1346_vm2, %v1865_v5 }
 0xa87   : > { %2255 = vmatprep.mubr.bf16.mxu0 %v4345_v16 }
 0xb46   : > { %v1908_v8 = vpop.f32.mrf.mxu0 }
 0xb47   : > { %v1914_v9 = vpack.c.bf16 %v1908_v8, %v1908_v8  ;;  %v3803_v8 = vld [vmem:[%s4822_s14 + $0xf8] sm:$0xff]  }
 0xb48   : > { %v3479_v33 = vpop.f32.mrf.mxu0 }
 0xb49   : > { %3486 = vmatmul.mubr.msk.bf16.vlgmr.msra.gmra.mxu1 %vm1291_vm1, %v1914_v9  ;;  %v3804_v9 = vld [vmem:[%s4822_s14 + $0x38] sm:$0xff]  }
 0xb4a   : > { %v1911_v10 = vpop.f32.mrf.mxu0  ;;  %2296 = vmatprep.mubr.bf16.mxu1 %v4345_v16  ;;  %v3756_v16 = vld [vmem:[%s4814_s13 + $0xe4] ss:$16 sps:$4 sm:$0xff]   ;;  %2265 = vmatpush1.bf16.msra.mxu1 %v3757_v23  ;;  %v3805_v33 = vld [vmem:[%s4822_s14 + $0xb8] sm:$0xff]  }
 0xb4b   : > { %2223 = vmatprep.subr.bf16.mxu0 %v3756_v16  ;;  %2266 = vmatprep.subr.bf16.mxu1 %v3765_v27  ;;  %v3806_v10 = vld [vmem:[%s4822_s14 + $0x70] sm:$0xff]   ;;  %v3817_v16 = vld [vmem:[%s4822_s14 + $0xa0] sm:$0xff]   ;;  %v3818_v23 = vld [vmem:[%s4822_s14 + $0x58] sm:$0xff]  }
 0xb4c   : > { %v3480_v11 = vpop.f32.mrf.mxu0  ;;  %2224 = vmatpush1.bf16.msra.mxu0 %v3754_v21  ;;  %v3816_v21 = vld [vmem:[%s4822_s14 + $0x20] sm:$0xff]   ;;  %v3821_v27 = vld [vmem:[%s4822_s14 + $0x98] sm:$0xff]  }
 0xb4d   : > { %2225 = vmatprep.subr.bf16.mxu0 %v3762_v26  ;;  %v3807_v11 = vld [vmem:[%s4822_s14 + $0xf0] sm:$0xff]   ;;  %v3820_v26 = vld [vmem:[%s4822_s14 + $0x18] sm:$0xff]  }
 0xb4e   : > { %2267 = vmatpush1.bf16.msra.mxu1 %v3763_v29  ;;  %v3823_v29 = vld [vmem:[%s4822_s14 + $0xd0] sm:$0xff]  }
 0xb4f   : > { %2268 = vmatprep.subr.bf16.mxu1 %v3771_v39  ;;  %v3829_v39 = vld [vmem:[%s4822_s14 + $0x88] sm:$0xff]  }
 0xb50   : > { %2226 = vmatpush1.bf16.msra.mxu0 %v3760_v28  ;;  %v3822_v28 = vld [vmem:[%s4822_s14 + $0x50] sm:$0xff]  }
 0xb51   : > { %2227 = vmatprep.subr.bf16.mxu0 %v3768_v38  ;;  %v3828_v38 = vld [vmem:[%s4822_s14 + $0x8] sm:$0xff]  }
 0xb52   : > { %2269 = vmatpush1.bf16.msra.mxu1 %v3769_v49  ;;  %v3831_v49 = vld [vmem:[%s4822_s14 + $0xc0] sm:$0xff]  }
 0xb53   : > { %2270 = vmatprep.subr.bf16.mxu1 %v3777_v43  ;;  %v2057_v43 = vsub.s32 3, %v4897_v35 }
 0xb54   : > { %2228 = vmatpush1.bf16.msra.mxu0 %v3766_v46  ;;  %v3830_v46 = vld [vmem:[%s4822_s14 + $0x40] sm:$0xff]  }
 0xb55   : > { %2229 = vmatprep.subr.bf16.mxu0 %v3774_v41  ;;  %v3833_v41 = vld [vmem:[%s4822_s14 + $0x80] sm:$0xff]  }
 0xb56   : > { %2271 = vmatpush1.bf16.msra.mxu1 %v3775_v42  ;;  %v2041_v42 = vld [vmem:[%s4854_s10] sm:$0xf] }
 0xb57   : > { %2272 = vmatprep.subr.bf16.mxu1 %v3783_v45  ;;  %v2054_v45 = vrot.slane %v2041_v42, %v1057_v22 }
 0xb58   : > { %2230 = vmatpush1.bf16.msra.mxu0 %v3772_v40  ;;  %v3832_v40 = vld [vmem:[%s4822_s14] sm:$0xff]  }
 0xb59   : > { %2231 = vmatprep.subr.bf16.mxu0 %v3780_v44  ;;  %v2046_v44 = vrot.slane %v2041_v42, %v1049_v37 }
 0xb5a   : > { %2273 = vmatpush1.bf16.msra.mxu1 %v3781_v48  ;;  %v2058_v48 = vrot.slane %v2041_v42, %v2057_v43 }
 0xb5b   : > { %2274 = vmatprep.subr.bf16.mxu1 %v3789_v51 }
 0xb5c   : > { %2232 = vmatpush1.bf16.msra.mxu0 %v3778_v47  ;;  %v2050_v47 = vrot.slane %v2041_v42, %v1053_v36 }
 0xb5d   : > { %2233 = vmatprep.subr.bf16.mxu0 %v3786_v50 }
 0xb5e   : > { %2275 = vmatpush1.bf16.msra.mxu1 %v3787_v53 }
 0xb5f   : > { %2276 = vmatprep.subr.bf16.mxu1 %v3795_v55 }
 0xb60   : > { %2234 = vmatpush1.bf16.msra.mxu0 %v3784_v52 }
 0xb61   : > { %2235 = vmatprep.subr.bf16.mxu0 %v3792_v54 }
 0xb62   : > { %2277 = vmatpush1.bf16.msra.mxu1 %v3793_v57 }
 0xb63   : > { %2278 = vmatprep.subr.bf16.mxu1 %v3801_v62 }
 0xb64   : > { %2236 = vmatpush1.bf16.msra.mxu0 %v3790_v56 }
 0xb65   : > { %2237 = vmatprep.subr.bf16.mxu0 %v3798_v58 }
 0xb68   : > { %2238 = vmatpush1.bf16.msra.mxu0 %v3796_v59 }
 0xb69   : > { %3328 = vmatprep.subr.bf16.mxu0 %v3802_v7 }
 0xc09   : > { %v1964_v12 = vpop.f32.mrf.mxu1 }
 0xc0a   : > { %v1970_v14 = vadd.f32 %v1964_v12, %v1801_v60  ;;  %v3799_v60 = vld [vmem:[%s4814_s13 + $0x8] ss:$16 sps:$4 sm:$0xff]   ;;  %v3808_v12 = vld [vmem:[%s4822_s14 + $0x30] sm:$0xff]  }
 0xc0b   : > { %v3487_v15 = vpop.f32.mrf.mxu1  ;;  %2279 = vmatpush1.bf16.msra.mxu1 %v3799_v60 }
 0xc0c   : > { %v1978_v17 = vadd.f32 %v3212_v13, %v1970_v14  ;;  %3350 = vmatprep.subr.bf16.mxu1 %v3803_v8  ;;  %v3809_v13 = vld [vmem:[%s4822_s14 + $0xb0] sm:$0xff]   ;;  %v3810_v14 = vld [vmem:[%s4822_s14 + $0x68] sm:$0xff]  }
 0xc0d   : > { %v1967_v18 = vpop.f32.mrf.mxu1  ;;  %v3811_v15 = vld [vmem:[%s4822_s14 + $0xe8] sm:$0xff]  }
 0xc0e   : > { %v1979_v19 = vadd.f32 %v1978_v17, %v4887_v31  ;;  %v3812_v17 = vld [vmem:[%s4822_s14 + $0x28] sm:$0xff]  }
 0xc0f   : > { %v3488_v20 = vpop.f32.mrf.mxu1  ;;  %v3813_v18 = vld [vmem:[%s4822_s14 + $0xa8] sm:$0xff]  }
 0xc10   : > { %1982 = vadd.xlane.f32.xlu1 %v1979_v19  ;;  %v3815_v20 = vld [vmem:[%s4822_s14 + $0xe0] sm:$0xff]  }
 0xc99   : > { %v1983_v31 = vpop.xlane.xlu1 %1982 }
 0xc9a   : > { %v1985_v30 = vmul.f32 0.0078125, %v1983_v31  ;;  %v3824_v31 = vld [vmem:[%s4822_s14 + $0x10] sm:$0xff]  }
 0xc9c   : > { %v1986_v32 = vsub.f32 %v1979_v19, %v1985_v30  ;;  %v3814_v19 = vld [vmem:[%s4822_s14 + $0x60] sm:$0xff]   ;;  %v3825_v30 = vld [vmem:[%s4822_s14 + $0x90] sm:$0xff]  }
 0xc9e   : > { %v1987_v34 = vmul.f32 %v1986_v32, %v1986_v32 }
 0xca0   : > { %1988 = vadd.xlane.f32.xlu0 %v1987_v34  ;;  %v3827_v34 = vld [vmem:[%s4822_s14 + $0xc8] sm:$0xff]  }
 0xd29   : > { %v1989_v61 = vpop.xlane.xlu0 %1988 }
 0xd2a   : > { %v1990_v63 = vmul.f32 0.0078125, %v1989_v61 }
 0xd2c   : > { %v1991_v0 = vadd.f32 1e-12, %v1990_v63 }
 0xd2e   : > { %3850 = vrsqrt.f32 %v1991_v0 }
 0xd3b   : > { %v3851_v1 = vpop.eup %3850 }
 0xd3c   : > { %v1993_v3 = vmul.f32 %v3851_v1, %v1986_v32  ;;  %v3826_v32 = vld [vmem:[%s4822_s14 + $0x48] sm:$0xff]  }
 0xd3e   : > { %v2000_v25 = vmul.f32 %v3213_v2, %v1993_v3 }
 0xd40   : > { %v5084_v6 = vadd.f32 %v3214_v4, %v2000_v25 }
 0xd42   : > { %v2008_v5 = vpack.c.bf16 %v5084_v6, %v5084_v6 }
 0xd44   : > { %2256 = vmatmul.mubr.bf16.vlgmr.msra.gmra.mxu0 %v2008_v5  ;;  %2297 = vmatmul.mubr.bf16.vlgmr.msra.gmra.mxu1 %v2008_v5 }
 0xd45   : > { %3329 = vmatpush3.bf16.msra.mxu0 %v3804_v9  ;;  %3351 = vmatpush3.bf16.msra.mxu1 %v3805_v33 }
 0xd46   : > { %3330 = vmatprep.subr.bf16.mxu0 %v3806_v10  ;;  %3352 = vmatprep.subr.bf16.mxu1 %v3807_v11 }
 0xd49   : > { %3331 = vmatpush3.bf16.msra.mxu0 %v3808_v12  ;;  %3353 = vmatpush3.bf16.msra.mxu1 %v3809_v13 }
 0xd4a   : > { %3332 = vmatprep.subr.bf16.mxu0 %v3810_v14  ;;  %3354 = vmatprep.subr.bf16.mxu1 %v3811_v15 }
 0xd4d   : > { %3333 = vmatpush3.bf16.msra.mxu0 %v3812_v17  ;;  %3355 = vmatpush3.bf16.msra.mxu1 %v3813_v18 }
 0xd4e   : > { %3334 = vmatprep.subr.bf16.mxu0 %v3814_v19  ;;  %3356 = vmatprep.subr.bf16.mxu1 %v3815_v20 }
 0xd51   : > { %3335 = vmatpush3.bf16.msra.mxu0 %v3816_v21  ;;  %3357 = vmatpush3.bf16.msra.mxu1 %v3817_v16 }
 0xd52   : > { %3336 = vmatprep.subr.bf16.mxu0 %v3818_v23  ;;  %3358 = vmatprep.subr.bf16.mxu1 %v3819_v24 }
 0xd55   : > { %3337 = vmatpush3.bf16.msra.mxu0 %v3820_v26  ;;  %3359 = vmatpush3.bf16.msra.mxu1 %v3821_v27 }
 0xd56   : > { %3338 = vmatprep.subr.bf16.mxu0 %v3822_v28  ;;  %3360 = vmatprep.subr.bf16.mxu1 %v3823_v29 }
 0xd59   : > { %3339 = vmatpush3.bf16.msra.mxu0 %v3824_v31  ;;  %3361 = vmatpush3.bf16.msra.mxu1 %v3825_v30 }
 0xd5a   : > { %3340 = vmatprep.subr.bf16.mxu0 %v3826_v32  ;;  %3362 = vmatprep.subr.bf16.mxu1 %v3827_v34 }
 0xd5d   : > { %3341 = vmatpush3.bf16.msra.mxu0 %v3828_v38  ;;  %3363 = vmatpush3.bf16.msra.mxu1 %v3829_v39 }
 0xd5e   : > { %3342 = vmatprep.subr.bf16.mxu0 %v3830_v46  ;;  %3364 = vmatprep.subr.bf16.mxu1 %v3831_v49  ;;  %v3247_v49 = vld [vmem:[%s969_s29] ss:$0 sm:$0xff] }
 0xd61   : > { %3343 = vmatpush3.bf16.msra.mxu0 %v3832_v40  ;;  %3365 = vmatpush3.bf16.msra.mxu1 %v3833_v41 }
 0xe04   : > { %v2257_v50 = vpop.f32.mrf.mxu0  ;;  %v2298_v51 = vpop.f32.mrf.mxu1 }
 0xe05   : > { %v2258_v52 = vadd.f32 %v2257_v50, %v2046_v44  ;;  %v2299_v53 = vadd.f32 %v2298_v51, %v2054_v45 }
 0xe06   : > { %v2259_v54 = vpop.f32.mrf.mxu0  ;;  %v2300_v55 = vpop.f32.mrf.mxu1 }
 0xe07   : > { %v2305_v56 = vmul.f32 %v2258_v52, %v2258_v52  ;;  %v2307_v57 = vmul.f32 %v2299_v53, %v2299_v53  ;;  %v2260_v58 = vadd.f32 %v2259_v54, %v2050_v47  ;;  %v2301_v62 = vadd.f32 %v2300_v55, %v2058_v48 }
 0xe08   : > { %v2261_v59 = vpop.f32.mrf.mxu0  ;;  %v2302_v60 = vpop.f32.mrf.mxu1 }
 0xe09   : > { %v2309_v37 = vmul.f32 %v2305_v56, %v2258_v52  ;;  %v2311_v61 = vmul.f32 %v2307_v57, %v2299_v53  ;;  %v2306_v63 = vmul.f32 %v2260_v58, %v2260_v58  ;;  %v2308_v22 = vmul.f32 %v2301_v62, %v2301_v62  ;;  %v3280_v60 = vld [vmem:[%s972_s23] ss:$0 sm:$0xff] }
 0xe0a   : > { %v2262_v0 = vpop.f32.mrf.mxu0  ;;  %v2303_v35 = vpop.f32.mrf.mxu1 }
 0xe0b   : > { %v2313_v36 = vmul.f32 0.044715, %v2309_v37  ;;  %v2315_v1 = vmul.f32 0.044715, %v2311_v61  ;;  %v2310_v2 = vmul.f32 %v2306_v63, %v2260_v58  ;;  %v2312_v3 = vmul.f32 %v2308_v22, %v2301_v62 }
 0xe0d   : > { %v2317_v4 = vadd.f32 %v2313_v36, %v2258_v52  ;;  %v2319_v25 = vadd.f32 %v2315_v1, %v2299_v53  ;;  %v2314_v5 = vmul.f32 0.044715, %v2310_v2  ;;  %v2316_v7 = vmul.f32 0.044715, %v2312_v3 }
 0xe0f   : > { %v2321_v8 = vmul.f32 0.7978846, %v2317_v4  ;;  %v2323_v9 = vmul.f32 0.7978846, %v2319_v25  ;;  %v2318_v33 = vadd.f32 %v2314_v5, %v2260_v58  ;;  %v2320_v10 = vadd.f32 %v2316_v7, %v2301_v62 }
 0xe11   : > { %3852 = vtanh.f32 %v2321_v8  ;;  %v2322_v11 = vmul.f32 0.7978846, %v2318_v33  ;;  %v2324_v12 = vmul.f32 0.7978846, %v2320_v10 }
 0xe12   : > { %3854 = vtanh.f32 %v2323_v9 }
 0xe13   : > { %3856 = vtanh.f32 %v2322_v11 }
 0xe14   : > { %3858 = vtanh.f32 %v2324_v12 }
 0xe1e   : > { %v3853_v13 = vpop.eup %3852 }
 0xe1f   : > { %v3855_v14 = vpop.eup %3854  ;;  %v2329_v15 = vadd.f32 1.0, %v3853_v13 }
 0xe20   : > { %v3857_v17 = vpop.eup %3856  ;;  %v2331_v18 = vadd.f32 1.0, %v3855_v14 }
 0xe21   : > { %v3859_v19 = vpop.eup %3858  ;;  %v2330_v20 = vadd.f32 1.0, %v3857_v17  ;;  %v2333_v21 = vmul.f32 0.5, %v2329_v15 }
 0xe22   : > { %v2332_v16 = vadd.f32 1.0, %v3859_v19  ;;  %v2335_v23 = vmul.f32 0.5, %v2331_v18 }
 0xe23   : > { %v2334_v24 = vmul.f32 0.5, %v2330_v20  ;;  %v2337_v27 = vmul.f32 %v2333_v21, %v2258_v52 }
 0xe24   : > { %v2336_v26 = vmul.f32 0.5, %v2332_v16  ;;  %v2339_v29 = vmul.f32 %v2335_v23, %v2299_v53 }
 0xe25   : > { %v2338_v28 = vmul.f32 %v2334_v24, %v2260_v58  ;;  %v2341_v34 = vpack.c.bf16 %v2337_v27, %v2337_v27 }
 0xe26   : > { %v2340_v31 = vmul.f32 %v2336_v26, %v2301_v62  ;;  %v2343_v38 = vpack.c.bf16 %v2339_v29, %v2339_v29 }
 0xe27   : > { %v2342_v30 = vpack.c.bf16 %v2338_v28, %v2338_v28 }
 0xe28   : > { %v2344_v32 = vpack.c.bf16 %v2340_v31, %v2340_v31 }
 0xe29   : > { %2640 = vmatprep.mubr.bf16.mxu0 %v2342_v30 }
 0xe2a   : > { %2680 = vmatprep.mubr.bf16.mxu1 %v2344_v32  ;;  %2641 = vmatmul.mubr.bf16.vlgmr.msra.gmra.mxu0 %v2341_v34 }
 0xe2b   : > { %2681 = vmatmul.mubr.bf16.vlgmr.msra.gmra.mxu1 %v2343_v38 }
 0xeea   : > { %v3344_v39 = vpop.f32.mrf.mxu0 }
 0xeeb   : > { %v3366_v46 = vpop.f32.mrf.mxu1 }
 0xeec   : > { %v3345_v40 = vpop.f32.mrf.mxu0 }
 0xeed   : > { %v3346_v41 = vadd.f32 %v3345_v40, %v3344_v39  ;;  %v3367_v42 = vpop.f32.mrf.mxu1 }
 0xeee   : > { %v3347_v43 = vpop.f32.mrf.mxu0  ;;  %v3368_v45 = vadd.f32 %v3367_v42, %v3366_v46 }
 0xeef   : > { %v2643_v44 = vadd.f32 %v3346_v41, %v3247_v49  ;;  %v3369_v47 = vpop.f32.mrf.mxu1 }
 0xef0   : > { %v3348_v48 = vpop.f32.mrf.mxu0 }
 0xef1   : > { %v2683_v50 = vadd.f32 %v3368_v45, %v2643_v44  ;;  %v3370_v51 = vpop.f32.mrf.mxu1 }
 0xef3   : > { %v2688_v52 = vadd.f32 %v2683_v50, %v5084_v6  ;;  %v3281_v6 = vld [vmem:[%s975_s2] ss:$0 sm:$0xff] }
 0xef5   : > { %2691 = vadd.xlane.f32.xlu0 %v2688_v52 }
 0xf7e   : > { %v2692_v53 = vpop.xlane.xlu0 %2691 }
 0xf7f   : > { %v2693_v54 = vmul.f32 0.0078125, %v2692_v53 }
 0xf81   : > { %v2694_v55 = vsub.f32 %v2688_v52, %v2693_v54 }
 0xf83   : > { %v2695_v56 = vmul.f32 %v2694_v55, %v2694_v55 }
 0xf85   : > { %2696 = vadd.xlane.f32.xlu0 %v2695_v56 }
0x100e   : > { %v2697_v57 = vpop.xlane.xlu0 %2696 }
0x100f   : > { %v2698_v58 = vmul.f32 0.0078125, %v2697_v57 }
0x1011   : > { %v2699_v62 = vadd.f32 1e-12, %v2698_v58 }
0x1013   : > { %3860 = vrsqrt.f32 %v2699_v62 }
0x1020   : > { %v3861_v59 = vpop.eup %3860 }
0x1021   : > { %v2701_v37 = vmul.f32 %v3861_v59, %v2694_v55 }
0x1023   : > { %v2708_v61 = vmul.f32 %v3280_v60, %v2701_v37  ;;  %2720 = sbr.rel (%p3282_p6) target bundleno = 4365 (0x110d), region = 144 }
0x1025   : > { %v2715_v63 = vadd.f32 %v3281_v6, %v2708_v61 }
0x1027   : > { %2716 = vst [vmem:[#allocation2] sm:$0xff] %v2715_v63 }
0x1028   : > { %v2736_v22 = vld [vmem:[#allocation17 + $0x78] sm:$0xff]  ;;  %v4351_v0 = vmov 0.0   ;;  %v2735_v35 = vld [vmem:[#allocation17 + $0x70] sm:$0xff]  ;;  %vm4352_vm4 = vmmov 0   ;;  %v2734_v36 = vld [vmem:[#allocation17 + $0x68] sm:$0xff] }
0x1029   : > { %3489 = vmatprep.subr.mxu0 %v4351_v0  ;;  %3521 = vmatprep.mubr.msk.f32.mxu0 %vm4352_vm4, %v4351_v0  ;;  %v2733_v1 = vld [vmem:[#allocation17 + $0x60] sm:$0xff]  ;;  %v2732_v2 = vld [vmem:[#allocation17 + $0x58] sm:$0xff]  ;;  %v2731_v3 = vld [vmem:[#allocation17 + $0x50] sm:$0xff] }
0x102a   : > { %3490 = vmatpush3.msra.mxu0 %v2736_v22  ;;  %v2730_v4 = vld [vmem:[#allocation17 + $0x48] sm:$0xff]  ;;  %v2729_v25 = vld [vmem:[#allocation17 + $0x40] sm:$0xff]  ;;  %v2728_v5 = vld [vmem:[#allocation17 + $0x38] sm:$0xff] }
0x102b   : > { %3491 = vmatprep.subr.mxu0 %v4351_v0  ;;  %v2727_v7 = vld [vmem:[#allocation17 + $0x30] sm:$0xff]  ;;  %v2726_v8 = vld [vmem:[#allocation17 + $0x28] sm:$0xff]  ;;  %v2725_v9 = vld [vmem:[#allocation17 + $0x20] sm:$0xff] }
0x102c   : > { %3492 = vmatpush3.msra.mxu0 %v2735_v35  ;;  %v2724_v33 = vld [vmem:[#allocation17 + $0x18] sm:$0xff]  ;;  %v2723_v10 = vld [vmem:[#allocation17 + $0x10] sm:$0xff]  ;;  %v2722_v11 = vld [vmem:[#allocation17 + $0x8] sm:$0xff] }
0x102d   : > { %3493 = vmatprep.subr.mxu0 %v4351_v0  ;;  %v2721_v12 = vld [vmem:[#allocation17] sm:$0xff]  ;;  %v3283_v13 = vld [vmem:[%s5355_s22] ss:$0 sm:$0xff] }
0x102e   : > { %3494 = vmatpush3.msra.mxu0 %v2734_v36 }
0x102f   : > { %3495 = vmatprep.subr.mxu0 %v4351_v0 }
0x1030   : > { %3496 = vmatpush3.msra.mxu0 %v2733_v1 }
0x1031   : > { %3497 = vmatprep.subr.mxu0 %v4351_v0 }
0x1032   : > { %3498 = vmatpush3.msra.mxu0 %v2732_v2 }
0x1033   : > { %3499 = vmatprep.subr.mxu0 %v4351_v0 }
0x1034   : > { %3500 = vmatpush3.msra.mxu0 %v2731_v3 }
0x1035   : > { %3501 = vmatprep.subr.mxu0 %v4351_v0 }
0x1036   : > { %3502 = vmatpush3.msra.mxu0 %v2730_v4 }
0x1037   : > { %3503 = vmatprep.subr.mxu0 %v4351_v0 }
0x1038   : > { %3504 = vmatpush3.msra.mxu0 %v2729_v25 }
0x1039   : > { %3505 = vmatprep.subr.mxu0 %v4351_v0 }
0x103a   : > { %3506 = vmatpush3.msra.mxu0 %v2728_v5 }
0x103b   : > { %3507 = vmatprep.subr.mxu0 %v4351_v0 }
0x103c   : > { %3508 = vmatpush3.msra.mxu0 %v2727_v7 }
0x103d   : > { %3509 = vmatprep.subr.mxu0 %v4351_v0 }
0x103e   : > { %3510 = vmatpush3.msra.mxu0 %v2726_v8 }
0x103f   : > { %3511 = vmatprep.subr.mxu0 %v4351_v0 }
0x1040   : > { %3512 = vmatpush3.msra.mxu0 %v2725_v9 }
0x1041   : > { %3513 = vmatprep.subr.mxu0 %v4351_v0 }
0x1042   : > { %3514 = vmatpush3.msra.mxu0 %v2724_v33 }
0x1043   : > { %3515 = vmatprep.subr.mxu0 %v4351_v0 }
0x1044   : > { %3516 = vmatpush3.msra.mxu0 %v2723_v10 }
0x1045   : > { %3517 = vmatprep.subr.mxu0 %v4351_v0 }
0x1046   : > { %3518 = vmatpush3.msra.mxu0 %v2722_v11 }
0x1047   : > { %3519 = vmatprep.subr.mxu0 %v4351_v0 }
0x1048   : > { %3520 = vmatpush3.msra.mxu0 %v2721_v12 }
0x1049   : > { %3522 = vmatmul.mubr.f32.vlgmr.msra.gmra.mxu0 %v2715_v63 }
0x1109   : > { %v2810_v14 = vpop.f32.mrf.mxu0 }
0x110a   : > { %v2811_v15 = vadd.f32 %v3283_v13, %v2810_v14 }
0x110b   : > { %v3523_v17 = vpop.f32.mrf.mxu0 }
0x110c   : > { %2814 = vst [vmem:[%s4866_s15] sm:$0xff] %v2811_v15 }
0x110d PF: > { %s5356_s20 = sld [smem:[#allocation37_spill]]  ;;  %s2829_s6 = sshll.u32 %s4866_s15, 4  ;;  %s2830_s6 = int_to_ptr.vmem [resolvable:$true] %s2829_s6 }
0x110e   : > { %s5357_s28 = sld [smem:[#allocation48_spill]]  ;;  %s2816_s8 = scalar_lea.sflag [#allocation5], %s4754_s17 }
0x110f   : > { %s5358_s18 = sld [smem:[#allocation68_spill]]  ;;  %s4164_s9 = scalar_lea.vmem %s2830_s6, 128 }
0x1110   : > { %p4165_p1 = scmp.ne.s32.totalorder %s2830_s6, %s4164_s9  ;;  %s4353_s12 = smov [#allocation18]  }
0x1111   : > { %s4168_s16 = sshll.u32 %s4353_s12, 4  ;;  %s4169_s16 = int_to_ptr.vmem [resolvable:$false] %s4168_s16 }
0x1112   : > { %s4170_s21 = scalar_lea.vmem %s4169_s16, 256  ;;  %p4171_p11 = scmp.lt.s32.totalorder %s2830_s6, %s4169_s16 }
0x1113   : > { %s3285_s23 = sshll.u32 %s5356_s20, 7  ;;  %p4172_p2 = scmp.lt.s32.totalorder %s4170_s21, %s4164_s9 }
0x1114   : > { %p5359_p5 = scmp.ne.s32.totalorder %s5357_s28, 0 }
0x1115   : > { %s2827_s3 = scalar_lea.hbm %s5358_s18, %s3285_s23  ;;  %p4173_p7 = por %p4172_p2, %p4171_p11 }
0x1116   : > { %p4166_p10 = pnand %p4165_p1, %p5359_p5 }
0x1118   : > { %p4167_p9 = pneg %p4166_p10 }
0x111a   : > { %p4174_p3 = pnand %p4173_p7, %p4167_p9 }
0x111c   : > { %4177 = shalt.err (!%p4174_p3)
}
0x111d   : > { %s4178_s27 = scalar_lea.hbm %s2827_s3, 128  ;;  %s4182_s11 = scalar_lea.hbm %s5358_s18, 256 }
0x111e   : > { %p4179_p12 = scmp.ne.s32.totalorder %s2827_s3, %s4178_s27  ;;  %p4183_p4 = scmp.lt.s32.totalorder %s2827_s3, %s5358_s18 }
0x111f   : > { %p4184_p0 = scmp.lt.s32.totalorder %s4182_s11, %s4178_s27 }
0x1120   : > { %p4180_p8 = pnand %p4179_p12, %p5359_p5 }
0x1121   : > { %p4185_p6 = por %p4184_p0, %p4183_p4 }
0x1122   : > { %p4181_p13 = pneg %p4180_p8 }
0x1124   : > { %p4186_p1 = pnand %p4185_p6, %p4181_p13 }
0x1126   : > { %4189 = shalt.err (!%p4186_p1)
}
0x1127   : > { %3556 = dma.vmem_to_hbm [thread:$0]  (%p5359_p5), %s2830_s6, 128, %s2827_s3, %s2816_s8  }
0x1128 PF: > { %s5360_s30 = sld [smem:[#allocation40_spill]] }
0x1129   : > { %s5361_s19 = sld [smem:[#allocation33_spill]] }
0x112a   : > { %s5362_s4 = sld [smem:[#allocation49_spill]] }
0x112e   : > { %p3604_p10 = scmp.ge.s32.totalorder %s5360_s30, 2 }
0x112f   : > { %s2841_s24 = sand.u32 1, %s5361_s19  }
0x1130   : > { %p5363_p9 = scmp.ne.s32.totalorder %s5362_s4, 0  ;;  %s2842_s29 = scalar_lea.sflag [#allocation5], %s2841_s24 }
0x1132   : > { %p3594_p11 = pnand %p3604_p10, %p5363_p9 }
0x1134   : > { %p3595_p2 = pneg %p3594_p11 }
0x1136   : > { %4279 = dma.done.wait (%p3595_p2), %s2842_s29, 128  }
0x1137   : > { %4281 = vsyncadd (%p3595_p2), %s2842_s29, 4294967168  ;;  %s38_s2 = sadd.s32 1, %s5360_s30   ;;  %s5364_s27 = sld [smem:[#allocation31_spill]] }
0x1138   : > { %p35_p7 = scmp.ge.s32.totalorder %s38_s2, 6   ;;  %s5365_s28 = sld [smem:[#allocation32_spill]] }
0x1139   : > { %s5366_s29 = sld [smem:[#allocation46_spill]] }
0x113a   : > { %s5367_s30 = sld [smem:[#allocation34_spill]] }
0x113b   : > { %s5368_s0 = sld [smem:[#allocation35_spill]] }
0x113c   : > { %s5369_s19 = sld [smem:[#allocation47_spill]]  ;;  %37 = sbr.rel (!%p35_p7) target bundleno = 32 (0x20), region = 254 }
0x113d   : > { %s5370_s1 = sld [smem:[#allocation38_spill]] }
0x113e   : > { %s5371_s20 = sld [smem:[#allocation39_spill]] }
0x113f   : > { %s5372_s21 = sld [smem:[#allocation43_spill]] }
0x1140   : > { %s5373_s22 = sld [smem:[#allocation45_spill]] }
0x1141   :  { %2847 = vsyncpa [#allocation4], 1 }
0x1142   :  { %2849 = vsyncpa [#allocation4 + $0x1], 1 }
0x1143   :  { %2850 = vsyncpa [#allocation7], 1 }
0x1144   :  { %2852 = vsyncpa [#allocation7 + $0x1], 1 }
0x1145   :  { %2853 = vsyncpa [#allocation10], 1 }
0x1146   :  { %2854 = vsyncpa [#allocation5], 1 }
0x1147   :  { %2856 = vsyncpa [#allocation5 + $0x1], 1 }

</bundles_post_ra>
